<compile_context>
chip_gen: v6e
topology: v6e:2x2x1
jax: 0.10.0
libtpu: 0.0.40
codegen_flags: <defaults>
</compile_context>

<pallas_src>
import numpy as np

import jax
import jax.numpy as jnp
from jax.experimental import pallas as pl
from jax.experimental.pallas import tpu as pltpu

VMEM_SPEC = pl.BlockSpec(memory_space=pltpu.MemorySpace.VMEM)


# ------------------------------ fused kernel --------------------------------

def _net_kernel(x_ref, b1w_ref, b1b_ref, r1_ref, s1_ref,
                b2w_ref, b2b_ref, r2_ref, s2_ref,
                wf1_ref, bf1_ref, wf2_ref, bf2_ref, wf3_ref, bf3_ref,
                out_ref):
    f32 = jnp.float32
    n = x_ref.shape[0]
    x = x_ref[...]                                             # (N, 28, 28)

    # --- conv1 (1->10, 5x5 valid): 5 banded matmuls over the W axis ---------
    # rows = (n, oh)  [N*24],  cols = (ow, cout)  [24*10 = 240]
    y1 = b1b_ref[...]                                          # (1, 240) bias
    for i in range(5):
        xi = x[:, i:i + 24, :].reshape(n * 24, 28)
        y1 = y1 + jnp.dot(xi, b1w_ref[i], preferred_element_type=f32)

    # --- fused 2x2 max-pool + ReLU via even/odd 0/1 selection matmuls -------
    p1 = jnp.maximum(jnp.dot(r1_ref[0], y1, preferred_element_type=f32),
                     jnp.dot(r1_ref[1], y1, preferred_element_type=f32))   # (N*12, 240)
    a1 = jnp.maximum(jnp.dot(p1, s1_ref[0], preferred_element_type=f32),
                     jnp.dot(p1, s1_ref[1], preferred_element_type=f32))   # (N*12, 120)
    a1 = jnp.maximum(a1, 0.0).reshape(n, 12, 120)              # (N, 12, 12*10)

    # --- conv2 (10->20, 5x5 valid): 5 banded matmuls ------------------------
    # rows = (n, oh)  [N*8],  cols = (ow, cout)  [8*20 = 160]
    y2 = b2b_ref[...]                                          # (1, 160) bias
    for i in range(5):
        xi = a1[:, i:i + 8, :].reshape(n * 8, 120)
        y2 = y2 + jnp.dot(xi, b2w_ref[i], preferred_element_type=f32)
    # TODO(synk): nn.Dropout2d after conv2 is identity here (inference / eval mode).

    p2 = jnp.maximum(jnp.dot(r2_ref[0], y2, preferred_element_type=f32),
                     jnp.dot(r2_ref[1], y2, preferred_element_type=f32))   # (N*4, 160)
    a2 = jnp.maximum(jnp.dot(p2, s2_ref[0], preferred_element_type=f32),
                     jnp.dot(p2, s2_ref[1], preferred_element_type=f32))   # (N*4, 80)
    a2 = jnp.maximum(a2, 0.0).reshape(n, 4, 80)                # (N, 4, 4*20)

    # --- flatten to (N, 320); NCHW permutation is folded into wf1's rows ----
    xf = jnp.concatenate([a2[:, p, :] for p in range(4)], axis=1)          # (N, 320)

    # --- fc head: fc1 -> relu -> fc2 -> relu -> fc3 -> log_softmax ----------
    h1 = jnp.maximum(
        jnp.dot(xf, wf1_ref[...], preferred_element_type=f32) + bf1_ref[...], 0.0)
    # TODO(synk): F.dropout after fc1 is identity here (inference / eval mode).
    h2 = jnp.maximum(
        jnp.dot(h1, wf2_ref[...], preferred_element_type=f32) + bf2_ref[...], 0.0)
    z = jnp.dot(h2, wf3_ref[...], preferred_element_type=f32) + bf3_ref[...]

    m = jnp.max(z, axis=-1, keepdims=True)
    e = jnp.exp(z - m)
    out_ref[...] = z - m - jnp.log(jnp.sum(e, axis=-1, keepdims=True))


def net_forward(x_nchw, kp):
    # x_nchw: (N, 1, 28, 28) float32
    n = x_nchw.shape[0]
    x = x_nchw.reshape(n, 28, 28)          # Cin == 1, squeeze (free, no transpose)
    args = (x, kp["B1"], kp["b1t"], kp["R1"], kp["S1"],
            kp["B2"], kp["b2t"], kp["R2"], kp["S2"],
            kp["Wf1"], kp["bf1"], kp["Wf2"], kp["bf2"], kp["Wf3"], kp["bf3"])
    return pl.pallas_call(
        _net_kernel,
        out_shape=jax.ShapeDtypeStruct((n, 10), jnp.float32),
        in_specs=[VMEM_SPEC] * len(args),
        out_specs=VMEM_SPEC,
    )(*args)


# ------------------------- parameters & host-side packing --------------------

def init_torch_params(key):
    """Deterministic parameters in PyTorch's native layouts."""
    ks = jax.random.split(key, 10)

    def u(k, shape, fan_in):
        bound = 1.0 / float(np.sqrt(fan_in))
        return jax.random.uniform(k, shape, jnp.float32, -bound, bound)

    return dict(
        w1=u(ks[0], (10, 1, 5, 5), 25),    b1=u(ks[1], (10,), 25),
        w2=u(ks[2], (20, 10, 5, 5), 250),  b2=u(ks[3], (20,), 250),
        wf1=u(ks[4], (50, 320), 320),      bf1=u(ks[5], (50,), 320),
        wf2=u(ks[6], (20, 50), 50),        bf2=u(ks[7], (20,), 50),
        wf3=u(ks[8], (10, 20), 20),        bf3=u(ks[9], (10,), 20),
    )


def build_kernel_params(tp, batch):
    """One-time host packing: banded conv weights, pool selectors, permuted fc1."""
    w1 = np.asarray(tp["w1"]); b1 = np.asarray(tp["b1"])
    w2 = np.asarray(tp["w2"]); b2 = np.asarray(tp["b2"])

    # conv1 banded weights: B1[i, w_in, ow*10 + c] = w1[c, 0, i, w_in - ow]
    B1 = np.zeros((5, 28, 24 * 10), np.float32)
    for i in range(5):
        for ow in range(24):
            for j in range(5):
                B1[i, ow + j, ow * 10:(ow + 1) * 10] = w1[:, 0, i, j]
    b1t = np.tile(b1, 24).reshape(1, 240).astype(np.float32)

    # conv2 banded weights: B2[i, w_in*10 + cin, ow*20 + c] = w2[c, cin, i, w_in - ow]
    B2 = np.zeros((5, 12 * 10, 8 * 20), np.float32)
    for i in range(5):
        for ow in range(8):
            for j in range(5):
                B2[i, (ow + j) * 10:(ow + j + 1) * 10,
                   ow * 20:(ow + 1) * 20] = w2[:, :, i, j].T
    b2t = np.tile(b2, 8).reshape(1, 160).astype(np.float32)

    def pool_rows(nb, oh):        # even/odd row selectors, rows = (n, oh)
        ph = oh // 2
        r = np.zeros((2, nb * ph, nb * oh), np.float32)
        for b in range(nb):
            for k in range(ph):
                r[0, b * ph + k, b * oh + 2 * k] = 1.0
                r[1, b * ph + k, b * oh + 2 * k + 1] = 1.0
        return r

    def pool_cols(ow, c):         # even/odd column-block selectors, cols = (ow, c)
        pw = ow // 2
        s = np.zeros((2, ow * c, pw * c), np.float32)
        for k in range(pw):
            for cc in range(c):
                s[0, (2 * k) * c + cc, k * c + cc] = 1.0
                s[1, (2 * k + 1) * c + cc, k * c + cc] = 1.0
        return s

    R1 = pool_rows(batch, 24); S1 = pool_cols(24, 10)
    R2 = pool_rows(batch, 8);  S2 = pool_cols(8, 20)

    # fc1: fold the NHWC (ph, pw, c) flatten -> torch NCHW (c, ph, pw) flatten
    # into the weight rows: Wf1[ph*80 + pw*20 + c, :] = wf1_torch[:, c*16 + ph*4 + pw]
    perm = np.zeros(320, np.int64)
    for ph in range(4):
        for pw in range(4):
            for c in range(20):
                perm[ph * 80 + pw * 20 + c] = c * 16 + ph * 4 + pw
    Wf1 = np.asarray(tp["wf1"]).T[perm, :].astype(np.float32)      # (320, 50)
    bf1 = np.asarray(tp["bf1"]).reshape(1, -1).astype(np.float32)
    Wf2 = np.asarray(tp["wf2"]).T.astype(np.float32)               # (50, 20)
    bf2 = np.asarray(tp["bf2"]).reshape(1, -1).astype(np.float32)
    Wf3 = np.asarray(tp["wf3"]).T.astype(np.float32)               # (20, 10)
    bf3 = np.asarray(tp["bf3"]).reshape(1, -1).astype(np.float32)

    kp = dict(B1=B1, b1t=b1t, R1=R1, S1=S1, B2=B2, b2t=b2t, R2=R2, S2=S2,
              Wf1=Wf1, bf1=bf1, Wf2=Wf2, bf2=bf2, Wf3=Wf3, bf3=bf3)
    return {k: jnp.asarray(v) for k, v in kp.items()}


# ------------------------------ pure-JAX reference ---------------------------

def reference_forward(x_nchw, tp):
    dn = ("NCHW", "OIHW", "NCHW")
    n = x_nchw.shape[0]
    y = jax.lax.conv_general_dilated(x_nchw, tp["w1"], (1, 1), "VALID",
                                     dimension_numbers=dn)
    y = y + tp["b1"][None, :, None, None]
    y = y.reshape(n, 10, 12, 2, 12, 2).max(axis=(3, 5))
    y = jnp.maximum(y, 0.0)
    y = jax.lax.conv_general_dilated(y, tp["w2"], (1, 1), "VALID",
                                     dimension_numbers=dn)
    y = y + tp["b2"][None, :, None, None]
    y = y.reshape(n, 20, 4, 2, 4, 2).max(axis=(3, 5))
    y = jnp.maximum(y, 0.0)
    y = y.reshape(n, 320)
    y = jnp.maximum(y @ tp["wf1"].T + tp["bf1"], 0.0)
    y = jnp.maximum(y @ tp["wf2"].T + tp["bf2"], 0.0)
    y = y @ tp["wf3"].T + tp["bf3"]
    return jax.nn.log_softmax(y, axis=-1)


# ----------------------------------- main ------------------------------------

if __name__ == "__main__":
    key = jax.random.PRNGKey(0)
    k_x, k_p = jax.random.split(key)

    # MNIST-style input implied by the module: NCHW (batch=2, 1, 28, 28)
    x = jax.random.normal(k_x, (2, 1, 28, 28), jnp.float32)
    tparams = init_torch_params(k_p)
    kparams = build_kernel_params(tparams, batch=x.shape[0])

    out = jax.jit(net_forward)(x, kparams)
    out = jax.block_until_ready(out)

    assert out.shape == (2, 10), out.shape
    # log_softmax rows should sum (in prob space) to ~1
    assert jnp.allclose(jnp.sum(jnp.exp(out), axis=1), 1.0, atol=1e-3)
    # match the pure-JAX reference of the PyTorch module (eval mode)
    ref = reference_forward(x, tparams)
    assert jnp.allclose(out, ref, atol=5e-2, rtol=5e-2), float(jnp.max(jnp.abs(out - ref)))
    print("KERNEL_OK")
</pallas_src>

<mosaic_0001>
module attributes {stable_mosaic.version = 11 : i64} {
  func.func @_net_kernel(%arg0: memref<2x28x28xf32, #tpu.memory_space<vmem>>, %arg1: memref<5x28x240xf32, #tpu.memory_space<vmem>>, %arg2: memref<1x240xf32, #tpu.memory_space<vmem>>, %arg3: memref<2x24x48xf32, #tpu.memory_space<vmem>>, %arg4: memref<2x240x120xf32, #tpu.memory_space<vmem>>, %arg5: memref<5x120x160xf32, #tpu.memory_space<vmem>>, %arg6: memref<1x160xf32, #tpu.memory_space<vmem>>, %arg7: memref<2x8x16xf32, #tpu.memory_space<vmem>>, %arg8: memref<2x160x80xf32, #tpu.memory_space<vmem>>, %arg9: memref<320x50xf32, #tpu.memory_space<vmem>>, %arg10: memref<1x50xf32, #tpu.memory_space<vmem>>, %arg11: memref<50x20xf32, #tpu.memory_space<vmem>>, %arg12: memref<1x20xf32, #tpu.memory_space<vmem>>, %arg13: memref<20x10xf32, #tpu.memory_space<vmem>>, %arg14: memref<1x10xf32, #tpu.memory_space<vmem>>, %arg15: memref<2x10xf32, #tpu.memory_space<vmem>>) attributes {dimension_semantics = [], scalar_prefetch = 0 : i64, scratch_operands = 0 : i64, tpu.core_type = #tpu.core_type<tc>} {
    %c0 = arith.constant 0 : index
    %c0_0 = arith.constant 0 : index
    %c0_1 = arith.constant 0 : index
    %0 = vector.load %arg0[%c0, %c0_0, %c0_1] : memref<2x28x28xf32, #tpu.memory_space<vmem>>, vector<2x28x28xf32>
    %c0_2 = arith.constant 0 : index
    %c0_3 = arith.constant 0 : index
    %1 = vector.load %arg2[%c0_2, %c0_3] : memref<1x240xf32, #tpu.memory_space<vmem>>, vector<1x240xf32>
    %2 = vector.extract_strided_slice %0 {offsets = [0, 0, 0], sizes = [2, 24, 28], strides = [1, 1, 1]} : vector<2x28x28xf32> to vector<2x24x28xf32>
    %3 = vector.shape_cast %2 : vector<2x24x28xf32> to vector<48x28xf32>
    %c0_4 = arith.constant 0 : index
    %c0_5 = arith.constant 0 : index
    %c0_6 = arith.constant 0 : index
    %4 = vector.load %arg1[%c0_4, %c0_5, %c0_6] : memref<5x28x240xf32, #tpu.memory_space<vmem>>, vector<1x28x240xf32>
    %5 = vector.shape_cast %4 : vector<1x28x240xf32> to vector<28x240xf32>
    %cst = arith.constant dense<0.000000e+00> : vector<48x240xf32>
    %6 = tpu.matmul %3, %5, %cst {dimension_numbers = #tpu.dot_dimension_numbers<[1], [0], [0], [1], [0, 0, 1, 1], [], []>} : vector<48x28xf32>, vector<28x240xf32>, vector<48x240xf32> -> vector<48x240xf32>
    %7 = vector.broadcast %1 : vector<1x240xf32> to vector<48x240xf32>
    %8 = arith.addf %7, %6 : vector<48x240xf32>
    %9 = vector.extract_strided_slice %0 {offsets = [0, 1, 0], sizes = [2, 24, 28], strides = [1, 1, 1]} : vector<2x28x28xf32> to vector<2x24x28xf32>
    %10 = vector.shape_cast %9 : vector<2x24x28xf32> to vector<48x28xf32>
    %c1 = arith.constant 1 : index
    %c0_7 = arith.constant 0 : index
    %c0_8 = arith.constant 0 : index
    %11 = vector.load %arg1[%c1, %c0_7, %c0_8] : memref<5x28x240xf32, #tpu.memory_space<vmem>>, vector<1x28x240xf32>
    %12 = vector.shape_cast %11 : vector<1x28x240xf32> to vector<28x240xf32>
    %cst_9 = arith.constant dense<0.000000e+00> : vector<48x240xf32>
    %13 = tpu.matmul %10, %12, %cst_9 {dimension_numbers = #tpu.dot_dimension_numbers<[1], [0], [0], [1], [0, 0, 1, 1], [], []>} : vector<48x28xf32>, vector<28x240xf32>, vector<48x240xf32> -> vector<48x240xf32>
    %14 = arith.addf %8, %13 : vector<48x240xf32>
    %15 = vector.extract_strided_slice %0 {offsets = [0, 2, 0], sizes = [2, 24, 28], strides = [1, 1, 1]} : vector<2x28x28xf32> to vector<2x24x28xf32>
    %16 = vector.shape_cast %15 : vector<2x24x28xf32> to vector<48x28xf32>
    %c2 = arith.constant 2 : index
    %c0_10 = arith.constant 0 : index
    %c0_11 = arith.constant 0 : index
    %17 = vector.load %arg1[%c2, %c0_10, %c0_11] : memref<5x28x240xf32, #tpu.memory_space<vmem>>, vector<1x28x240xf32>
    %18 = vector.shape_cast %17 : vector<1x28x240xf32> to vector<28x240xf32>
    %cst_12 = arith.constant dense<0.000000e+00> : vector<48x240xf32>
    %19 = tpu.matmul %16, %18, %cst_12 {dimension_numbers = #tpu.dot_dimension_numbers<[1], [0], [0], [1], [0, 0, 1, 1], [], []>} : vector<48x28xf32>, vector<28x240xf32>, vector<48x240xf32> -> vector<48x240xf32>
    %20 = arith.addf %14, %19 : vector<48x240xf32>
    %21 = vector.extract_strided_slice %0 {offsets = [0, 3, 0], sizes = [2, 24, 28], strides = [1, 1, 1]} : vector<2x28x28xf32> to vector<2x24x28xf32>
    %22 = vector.shape_cast %21 : vector<2x24x28xf32> to vector<48x28xf32>
    %c3 = arith.constant 3 : index
    %c0_13 = arith.constant 0 : index
    %c0_14 = arith.constant 0 : index
    %23 = vector.load %arg1[%c3, %c0_13, %c0_14] : memref<5x28x240xf32, #tpu.memory_space<vmem>>, vector<1x28x240xf32>
    %24 = vector.shape_cast %23 : vector<1x28x240xf32> to vector<28x240xf32>
    %cst_15 = arith.constant dense<0.000000e+00> : vector<48x240xf32>
    %25 = tpu.matmul %22, %24, %cst_15 {dimension_numbers = #tpu.dot_dimension_numbers<[1], [0], [0], [1], [0, 0, 1, 1], [], []>} : vector<48x28xf32>, vector<28x240xf32>, vector<48x240xf32> -> vector<48x240xf32>
    %26 = arith.addf %20, %25 : vector<48x240xf32>
    %27 = vector.extract_strided_slice %0 {offsets = [0, 4, 0], sizes = [2, 24, 28], strides = [1, 1, 1]} : vector<2x28x28xf32> to vector<2x24x28xf32>
    %28 = vector.shape_cast %27 : vector<2x24x28xf32> to vector<48x28xf32>
    %c4 = arith.constant 4 : index
    %c0_16 = arith.constant 0 : index
    %c0_17 = arith.constant 0 : index
    %29 = vector.load %arg1[%c4, %c0_16, %c0_17] : memref<5x28x240xf32, #tpu.memory_space<vmem>>, vector<1x28x240xf32>
    %30 = vector.shape_cast %29 : vector<1x28x240xf32> to vector<28x240xf32>
    %cst_18 = arith.constant dense<0.000000e+00> : vector<48x240xf32>
    %31 = tpu.matmul %28, %30, %cst_18 {dimension_numbers = #tpu.dot_dimension_numbers<[1], [0], [0], [1], [0, 0, 1, 1], [], []>} : vector<48x28xf32>, vector<28x240xf32>, vector<48x240xf32> -> vector<48x240xf32>
    %32 = arith.addf %26, %31 : vector<48x240xf32>
    %c0_19 = arith.constant 0 : index
    %c0_20 = arith.constant 0 : index
    %c0_21 = arith.constant 0 : index
    %33 = vector.load %arg3[%c0_19, %c0_20, %c0_21] : memref<2x24x48xf32, #tpu.memory_space<vmem>>, vector<1x24x48xf32>
    %34 = vector.shape_cast %33 : vector<1x24x48xf32> to vector<24x48xf32>
    %cst_22 = arith.constant dense<0.000000e+00> : vector<24x240xf32>
    %35 = tpu.matmul %34, %32, %cst_22 {dimension_numbers = #tpu.dot_dimension_numbers<[1], [0], [0], [1], [0, 0, 1, 1], [], []>} : vector<24x48xf32>, vector<48x240xf32>, vector<24x240xf32> -> vector<24x240xf32>
    %c1_23 = arith.constant 1 : index
    %c0_24 = arith.constant 0 : index
    %c0_25 = arith.constant 0 : index
    %36 = vector.load %arg3[%c1_23, %c0_24, %c0_25] : memref<2x24x48xf32, #tpu.memory_space<vmem>>, vector<1x24x48xf32>
    %37 = vector.shape_cast %36 : vector<1x24x48xf32> to vector<24x48xf32>
    %cst_26 = arith.constant dense<0.000000e+00> : vector<24x240xf32>
    %38 = tpu.matmul %37, %32, %cst_26 {dimension_numbers = #tpu.dot_dimension_numbers<[1], [0], [0], [1], [0, 0, 1, 1], [], []>} : vector<24x48xf32>, vector<48x240xf32>, vector<24x240xf32> -> vector<24x240xf32>
    %39 = arith.maximumf %35, %38 : vector<24x240xf32>
    %c0_27 = arith.constant 0 : index
    %c0_28 = arith.constant 0 : index
    %c0_29 = arith.constant 0 : index
    %40 = vector.load %arg4[%c0_27, %c0_28, %c0_29] : memref<2x240x120xf32, #tpu.memory_space<vmem>>, vector<1x240x120xf32>
    %41 = vector.shape_cast %40 : vector<1x240x120xf32> to vector<240x120xf32>
    %cst_30 = arith.constant dense<0.000000e+00> : vector<24x120xf32>
    %42 = tpu.matmul %39, %41, %cst_30 {dimension_numbers = #tpu.dot_dimension_numbers<[1], [0], [0], [1], [0, 0, 1, 1], [], []>} : vector<24x240xf32>, vector<240x120xf32>, vector<24x120xf32> -> vector<24x120xf32>
    %c1_31 = arith.constant 1 : index
    %c0_32 = arith.constant 0 : index
    %c0_33 = arith.constant 0 : index
    %43 = vector.load %arg4[%c1_31, %c0_32, %c0_33] : memref<2x240x120xf32, #tpu.memory_space<vmem>>, vector<1x240x120xf32>
    %44 = vector.shape_cast %43 : vector<1x240x120xf32> to vector<240x120xf32>
    %cst_34 = arith.constant dense<0.000000e+00> : vector<24x120xf32>
    %45 = tpu.matmul %39, %44, %cst_34 {dimension_numbers = #tpu.dot_dimension_numbers<[1], [0], [0], [1], [0, 0, 1, 1], [], []>} : vector<24x240xf32>, vector<240x120xf32>, vector<24x120xf32> -> vector<24x120xf32>
    %46 = arith.maximumf %42, %45 : vector<24x120xf32>
    %cst_35 = arith.constant 0.000000e+00 : f32
    %47 = vector.broadcast %cst_35 : f32 to vector<24x120xf32>
    %48 = arith.maximumf %46, %47 : vector<24x120xf32>
    %49 = vector.shape_cast %48 : vector<24x120xf32> to vector<2x12x120xf32>
    %c0_36 = arith.constant 0 : index
    %c0_37 = arith.constant 0 : index
    %50 = vector.load %arg6[%c0_36, %c0_37] : memref<1x160xf32, #tpu.memory_space<vmem>>, vector<1x160xf32>
    %51 = vector.extract_strided_slice %49 {offsets = [0, 0, 0], sizes = [2, 8, 120], strides = [1, 1, 1]} : vector<2x12x120xf32> to vector<2x8x120xf32>
    %52 = vector.shape_cast %51 : vector<2x8x120xf32> to vector<16x120xf32>
    %c0_38 = arith.constant 0 : index
    %c0_39 = arith.constant 0 : index
    %c0_40 = arith.constant 0 : index
    %53 = vector.load %arg5[%c0_38, %c0_39, %c0_40] : memref<5x120x160xf32, #tpu.memory_space<vmem>>, vector<1x120x160xf32>
    %54 = vector.shape_cast %53 : vector<1x120x160xf32> to vector<120x160xf32>
    %cst_41 = arith.constant dense<0.000000e+00> : vector<16x160xf32>
    %55 = tpu.matmul %52, %54, %cst_41 {dimension_numbers = #tpu.dot_dimension_numbers<[1], [0], [0], [1], [0, 0, 1, 1], [], []>} : vector<16x120xf32>, vector<120x160xf32>, vector<16x160xf32> -> vector<16x160xf32>
    %56 = vector.broadcast %50 : vector<1x160xf32> to vector<16x160xf32>
    %57 = arith.addf %56, %55 : vector<16x160xf32>
    %58 = vector.extract_strided_slice %49 {offsets = [0, 1, 0], sizes = [2, 8, 120], strides = [1, 1, 1]} : vector<2x12x120xf32> to vector<2x8x120xf32>
    %59 = vector.shape_cast %58 : vector<2x8x120xf32> to vector<16x120xf32>
    %c1_42 = arith.constant 1 : index
    %c0_43 = arith.constant 0 : index
    %c0_44 = arith.constant 0 : index
    %60 = vector.load %arg5[%c1_42, %c0_43, %c0_44] : memref<5x120x160xf32, #tpu.memory_space<vmem>>, vector<1x120x160xf32>
    %61 = vector.shape_cast %60 : vector<1x120x160xf32> to vector<120x160xf32>
    %cst_45 = arith.constant dense<0.000000e+00> : vector<16x160xf32>
    %62 = tpu.matmul %59, %61, %cst_45 {dimension_numbers = #tpu.dot_dimension_numbers<[1], [0], [0], [1], [0, 0, 1, 1], [], []>} : vector<16x120xf32>, vector<120x160xf32>, vector<16x160xf32> -> vector<16x160xf32>
    %63 = arith.addf %57, %62 : vector<16x160xf32>
    %64 = vector.extract_strided_slice %49 {offsets = [0, 2, 0], sizes = [2, 8, 120], strides = [1, 1, 1]} : vector<2x12x120xf32> to vector<2x8x120xf32>
    %65 = vector.shape_cast %64 : vector<2x8x120xf32> to vector<16x120xf32>
    %c2_46 = arith.constant 2 : index
    %c0_47 = arith.constant 0 : index
    %c0_48 = arith.constant 0 : index
    %66 = vector.load %arg5[%c2_46, %c0_47, %c0_48] : memref<5x120x160xf32, #tpu.memory_space<vmem>>, vector<1x120x160xf32>
    %67 = vector.shape_cast %66 : vector<1x120x160xf32> to vector<120x160xf32>
    %cst_49 = arith.constant dense<0.000000e+00> : vector<16x160xf32>
    %68 = tpu.matmul %65, %67, %cst_49 {dimension_numbers = #tpu.dot_dimension_numbers<[1], [0], [0], [1], [0, 0, 1, 1], [], []>} : vector<16x120xf32>, vector<120x160xf32>, vector<16x160xf32> -> vector<16x160xf32>
    %69 = arith.addf %63, %68 : vector<16x160xf32>
    %70 = vector.extract_strided_slice %49 {offsets = [0, 3, 0], sizes = [2, 8, 120], strides = [1, 1, 1]} : vector<2x12x120xf32> to vector<2x8x120xf32>
    %71 = vector.shape_cast %70 : vector<2x8x120xf32> to vector<16x120xf32>
    %c3_50 = arith.constant 3 : index
    %c0_51 = arith.constant 0 : index
    %c0_52 = arith.constant 0 : index
    %72 = vector.load %arg5[%c3_50, %c0_51, %c0_52] : memref<5x120x160xf32, #tpu.memory_space<vmem>>, vector<1x120x160xf32>
    %73 = vector.shape_cast %72 : vector<1x120x160xf32> to vector<120x160xf32>
    %cst_53 = arith.constant dense<0.000000e+00> : vector<16x160xf32>
    %74 = tpu.matmul %71, %73, %cst_53 {dimension_numbers = #tpu.dot_dimension_numbers<[1], [0], [0], [1], [0, 0, 1, 1], [], []>} : vector<16x120xf32>, vector<120x160xf32>, vector<16x160xf32> -> vector<16x160xf32>
    %75 = arith.addf %69, %74 : vector<16x160xf32>
    %76 = vector.extract_strided_slice %49 {offsets = [0, 4, 0], sizes = [2, 8, 120], strides = [1, 1, 1]} : vector<2x12x120xf32> to vector<2x8x120xf32>
    %77 = vector.shape_cast %76 : vector<2x8x120xf32> to vector<16x120xf32>
    %c4_54 = arith.constant 4 : index
    %c0_55 = arith.constant 0 : index
    %c0_56 = arith.constant 0 : index
    %78 = vector.load %arg5[%c4_54, %c0_55, %c0_56] : memref<5x120x160xf32, #tpu.memory_space<vmem>>, vector<1x120x160xf32>
    %79 = vector.shape_cast %78 : vector<1x120x160xf32> to vector<120x160xf32>
    %cst_57 = arith.constant dense<0.000000e+00> : vector<16x160xf32>
    %80 = tpu.matmul %77, %79, %cst_57 {dimension_numbers = #tpu.dot_dimension_numbers<[1], [0], [0], [1], [0, 0, 1, 1], [], []>} : vector<16x120xf32>, vector<120x160xf32>, vector<16x160xf32> -> vector<16x160xf32>
    %81 = arith.addf %75, %80 : vector<16x160xf32>
    %c0_58 = arith.constant 0 : index
    %c0_59 = arith.constant 0 : index
    %c0_60 = arith.constant 0 : index
    %82 = vector.load %arg7[%c0_58, %c0_59, %c0_60] : memref<2x8x16xf32, #tpu.memory_space<vmem>>, vector<1x8x16xf32>
    %83 = vector.shape_cast %82 : vector<1x8x16xf32> to vector<8x16xf32>
    %cst_61 = arith.constant dense<0.000000e+00> : vector<8x160xf32>
    %84 = tpu.matmul %83, %81, %cst_61 {dimension_numbers = #tpu.dot_dimension_numbers<[1], [0], [0], [1], [0, 0, 1, 1], [], []>} : vector<8x16xf32>, vector<16x160xf32>, vector<8x160xf32> -> vector<8x160xf32>
    %c1_62 = arith.constant 1 : index
    %c0_63 = arith.constant 0 : index
    %c0_64 = arith.constant 0 : index
    %85 = vector.load %arg7[%c1_62, %c0_63, %c0_64] : memref<2x8x16xf32, #tpu.memory_space<vmem>>, vector<1x8x16xf32>
    %86 = vector.shape_cast %85 : vector<1x8x16xf32> to vector<8x16xf32>
    %cst_65 = arith.constant dense<0.000000e+00> : vector<8x160xf32>
    %87 = tpu.matmul %86, %81, %cst_65 {dimension_numbers = #tpu.dot_dimension_numbers<[1], [0], [0], [1], [0, 0, 1, 1], [], []>} : vector<8x16xf32>, vector<16x160xf32>, vector<8x160xf32> -> vector<8x160xf32>
    %88 = arith.maximumf %84, %87 : vector<8x160xf32>
    %c0_66 = arith.constant 0 : index
    %c0_67 = arith.constant 0 : index
    %c0_68 = arith.constant 0 : index
    %89 = vector.load %arg8[%c0_66, %c0_67, %c0_68] : memref<2x160x80xf32, #tpu.memory_space<vmem>>, vector<1x160x80xf32>
    %90 = vector.shape_cast %89 : vector<1x160x80xf32> to vector<160x80xf32>
    %cst_69 = arith.constant dense<0.000000e+00> : vector<8x80xf32>
    %91 = tpu.matmul %88, %90, %cst_69 {dimension_numbers = #tpu.dot_dimension_numbers<[1], [0], [0], [1], [0, 0, 1, 1], [], []>} : vector<8x160xf32>, vector<160x80xf32>, vector<8x80xf32> -> vector<8x80xf32>
    %c1_70 = arith.constant 1 : index
    %c0_71 = arith.constant 0 : index
    %c0_72 = arith.constant 0 : index
    %92 = vector.load %arg8[%c1_70, %c0_71, %c0_72] : memref<2x160x80xf32, #tpu.memory_space<vmem>>, vector<1x160x80xf32>
    %93 = vector.shape_cast %92 : vector<1x160x80xf32> to vector<160x80xf32>
    %cst_73 = arith.constant dense<0.000000e+00> : vector<8x80xf32>
    %94 = tpu.matmul %88, %93, %cst_73 {dimension_numbers = #tpu.dot_dimension_numbers<[1], [0], [0], [1], [0, 0, 1, 1], [], []>} : vector<8x160xf32>, vector<160x80xf32>, vector<8x80xf32> -> vector<8x80xf32>
    %95 = arith.maximumf %91, %94 : vector<8x80xf32>
    %cst_74 = arith.constant 0.000000e+00 : f32
    %96 = vector.broadcast %cst_74 : f32 to vector<8x80xf32>
    %97 = arith.maximumf %95, %96 : vector<8x80xf32>
    %98 = vector.shape_cast %97 : vector<8x80xf32> to vector<2x4x80xf32>
    %99 = vector.extract_strided_slice %98 {offsets = [0, 0, 0], sizes = [2, 1, 80], strides = [1, 1, 1]} : vector<2x4x80xf32> to vector<2x1x80xf32>
    %100 = vector.shape_cast %99 : vector<2x1x80xf32> to vector<2x80xf32>
    %101 = vector.extract_strided_slice %98 {offsets = [0, 1, 0], sizes = [2, 1, 80], strides = [1, 1, 1]} : vector<2x4x80xf32> to vector<2x1x80xf32>
    %102 = vector.shape_cast %101 : vector<2x1x80xf32> to vector<2x80xf32>
    %103 = vector.extract_strided_slice %98 {offsets = [0, 2, 0], sizes = [2, 1, 80], strides = [1, 1, 1]} : vector<2x4x80xf32> to vector<2x1x80xf32>
    %104 = vector.shape_cast %103 : vector<2x1x80xf32> to vector<2x80xf32>
    %105 = vector.extract_strided_slice %98 {offsets = [0, 3, 0], sizes = [2, 1, 80], strides = [1, 1, 1]} : vector<2x4x80xf32> to vector<2x1x80xf32>
    %106 = vector.shape_cast %105 : vector<2x1x80xf32> to vector<2x80xf32>
    %107 = tpu.concatenate %100, %102, %104, %106 in 1 : vector<2x80xf32>, vector<2x80xf32>, vector<2x80xf32>, vector<2x80xf32> -> vector<2x320xf32>
    %c0_75 = arith.constant 0 : index
    %c0_76 = arith.constant 0 : index
    %108 = vector.load %arg9[%c0_75, %c0_76] : memref<320x50xf32, #tpu.memory_space<vmem>>, vector<320x50xf32>
    %cst_77 = arith.constant dense<0.000000e+00> : vector<2x50xf32>
    %109 = tpu.matmul %107, %108, %cst_77 {dimension_numbers = #tpu.dot_dimension_numbers<[1], [0], [0], [1], [0, 0, 1, 1], [], []>} : vector<2x320xf32>, vector<320x50xf32>, vector<2x50xf32> -> vector<2x50xf32>
    %c0_78 = arith.constant 0 : index
    %c0_79 = arith.constant 0 : index
    %110 = vector.load %arg10[%c0_78, %c0_79] : memref<1x50xf32, #tpu.memory_space<vmem>>, vector<1x50xf32>
    %111 = vector.broadcast %110 : vector<1x50xf32> to vector<2x50xf32>
    %112 = arith.addf %109, %111 : vector<2x50xf32>
    %cst_80 = arith.constant 0.000000e+00 : f32
    %113 = vector.broadcast %cst_80 : f32 to vector<2x50xf32>
    %114 = arith.maximumf %112, %113 : vector<2x50xf32>
    %c0_81 = arith.constant 0 : index
    %c0_82 = arith.constant 0 : index
    %115 = vector.load %arg11[%c0_81, %c0_82] : memref<50x20xf32, #tpu.memory_space<vmem>>, vector<50x20xf32>
    %cst_83 = arith.constant dense<0.000000e+00> : vector<2x20xf32>
    %116 = tpu.matmul %114, %115, %cst_83 {dimension_numbers = #tpu.dot_dimension_numbers<[1], [0], [0], [1], [0, 0, 1, 1], [], []>} : vector<2x50xf32>, vector<50x20xf32>, vector<2x20xf32> -> vector<2x20xf32>
    %c0_84 = arith.constant 0 : index
    %c0_85 = arith.constant 0 : index
    %117 = vector.load %arg12[%c0_84, %c0_85] : memref<1x20xf32, #tpu.memory_space<vmem>>, vector<1x20xf32>
    %118 = vector.broadcast %117 : vector<1x20xf32> to vector<2x20xf32>
    %119 = arith.addf %116, %118 : vector<2x20xf32>
    %cst_86 = arith.constant 0.000000e+00 : f32
    %120 = vector.broadcast %cst_86 : f32 to vector<2x20xf32>
    %121 = arith.maximumf %119, %120 : vector<2x20xf32>
    %c0_87 = arith.constant 0 : index
    %c0_88 = arith.constant 0 : index
    %122 = vector.load %arg13[%c0_87, %c0_88] : memref<20x10xf32, #tpu.memory_space<vmem>>, vector<20x10xf32>
    %cst_89 = arith.constant dense<0.000000e+00> : vector<2x10xf32>
    %123 = tpu.matmul %121, %122, %cst_89 {dimension_numbers = #tpu.dot_dimension_numbers<[1], [0], [0], [1], [0, 0, 1, 1], [], []>} : vector<2x20xf32>, vector<20x10xf32>, vector<2x10xf32> -> vector<2x10xf32>
    %c0_90 = arith.constant 0 : index
    %c0_91 = arith.constant 0 : index
    %124 = vector.load %arg14[%c0_90, %c0_91] : memref<1x10xf32, #tpu.memory_space<vmem>>, vector<1x10xf32>
    %125 = vector.broadcast %124 : vector<1x10xf32> to vector<2x10xf32>
    %126 = arith.addf %123, %125 : vector<2x10xf32>
    %cst_92 = arith.constant dense<0xFF800000> : vector<2xf32>
    %127 = vector.multi_reduction <maximumf>, %126, %cst_92 [1] : vector<2x10xf32> to vector<2xf32>
    %128 = vector.shape_cast %127 : vector<2xf32> to vector<2x1xf32>
    %129 = vector.broadcast %128 : vector<2x1xf32> to vector<2x10xf32>
    %130 = arith.subf %126, %129 : vector<2x10xf32>
    %131 = math.exp %130 : vector<2x10xf32>
    %132 = vector.broadcast %128 : vector<2x1xf32> to vector<2x10xf32>
    %133 = arith.subf %126, %132 : vector<2x10xf32>
    %cst_93 = arith.constant dense<0.000000e+00> : vector<2xf32>
    %134 = vector.multi_reduction <add>, %131, %cst_93 [1] : vector<2x10xf32> to vector<2xf32>
    %135 = vector.shape_cast %134 : vector<2xf32> to vector<2x1xf32>
    %136 = math.log %135 : vector<2x1xf32>
    %137 = vector.broadcast %136 : vector<2x1xf32> to vector<2x10xf32>
    %138 = arith.subf %133, %137 : vector<2x10xf32>
    %c0_94 = arith.constant 0 : index
    %c0_95 = arith.constant 0 : index
    %139 = vector.load %arg15[%c0_94, %c0_95] : memref<2x10xf32, #tpu.memory_space<vmem>>, vector<2x10xf32>
    tpu.vector_store %arg15[%c0_94, %c0_95], %138 {strides = array<i32>} : memref<2x10xf32, #tpu.memory_space<vmem>>, vector<2x10xf32>,
    return
  }
}

</mosaic_0001>

<bundles_post_ra>
// kernel: net_forward.1
= control target key start
LH: loop header
LB: loop body
LE: loop exit
PB: predicated region body
PF: predicated region fallthrough
CT: control target
= control target key end

     0   :  { %vm87_vm0 = vcmask 1043456   ;;  %vm220_vm1 = vcmask 1046528   ;;  %vm68_vm2 = vcmask 228352   ;;  %v4861_v20 = vmov 0.0   ;;  %s4845_s0 = inlined_call_operand.vmem [shape: f32[2,28,28], index: 0, kind: input, shape index: {}]   ;;  %s4846_s1 = inlined_call_operand.vmem [shape: f32[5,28,240], index: 1, kind: input, shape index: {}]   ;;  %s4847_s2 = inlined_call_operand.vmem [shape: f32[1,240], index: 2, kind: input, shape index: {}]   ;;  %s4848_s3 = inlined_call_operand.vmem [shape: f32[2,24,48], index: 3, kind: input, shape index: {}]   ;;  %s4849_s4 = inlined_call_operand.vmem [shape: f32[2,240,120], index: 4, kind: input, shape index: {}]   ;;  %s4850_s5 = inlined_call_operand.vmem [shape: f32[5,120,160], index: 5, kind: input, shape index: {}]   ;;  %s4851_s6 = inlined_call_operand.vmem [shape: f32[1,160], index: 6, kind: input, shape index: {}]   ;;  %s4852_s7 = inlined_call_operand.vmem [shape: f32[2,8,16], index: 7, kind: input, shape index: {}]   ;;  %s4853_s8 = inlined_call_operand.vmem [shape: f32[2,160,80], index: 8, kind: input, shape index: {}]   ;;  %s4854_s9 = inlined_call_operand.vmem [shape: f32[320,50], index: 9, kind: input, shape index: {}]   ;;  %s4855_s10 = inlined_call_operand.vmem [shape: f32[1,50], index: 10, kind: input, shape index: {}]   ;;  %s4856_s11 = inlined_call_operand.vmem [shape: f32[50,20], index: 11, kind: input, shape index: {}]   ;;  %s4857_s12 = inlined_call_operand.vmem [shape: f32[1,20], index: 12, kind: input, shape index: {}]   ;;  %s4858_s13 = inlined_call_operand.vmem [shape: f32[20,10], index: 13, kind: input, shape index: {}]   ;;  %s4859_s14 = inlined_call_operand.vmem [shape: f32[1,10], index: 14, kind: input, shape index: {}]   ;;  %s4860_s15 = inlined_call_operand.hbm [shape: f32[2,10], index: 15, kind: output, shape index: {}]  }
   0x1   :  { %v67_v0 = vld [vmem:[%s4846_s1 + $0x38] sm:$0xf]  ;;  %v66_v1 = vld [vmem:[%s4846_s1 + $0x30] sm:$0xf]  ;;  %v65_v2 = vld [vmem:[%s4846_s1 + $0x28] sm:$0xff]  ;;  %158 = vmatprep.mubr.f32.mxu0 %v4861_v20  ;;  %326 = vmatprep.mubr.f32.mxu1 %v4861_v20 }
   0x2   :  { %2725 = vmatprep.subr.msk.mxu0 %vm87_vm0, %v67_v0  ;;  %v2740_v3 = vld [vmem:[%s4846_s1 + $0x78] sm:$0xf]  ;;  %v64_v4 = vld [vmem:[%s4846_s1 + $0x20] sm:$0xff]  ;;  %v2739_v5 = vld [vmem:[%s4846_s1 + $0x70] sm:$0xf] }
   0x3   :  { %2726 = vmatpush1.msk.msra.mxu0 %vm87_vm0, %v66_v1  ;;  %2741 = vmatprep.subr.msk.mxu1 %vm87_vm0, %v2740_v3  ;;  %v63_v6 = vld [vmem:[%s4846_s1 + $0x18] sm:$0xff]  ;;  %v2738_v7 = vld [vmem:[%s4846_s1 + $0x68] sm:$0xff]  ;;  %v62_v8 = vld [vmem:[%s4846_s1 + $0x10] sm:$0xff] }
   0x4   :  { %120 = vmatprep.subr.mxu0 %v65_v2  ;;  %2742 = vmatpush1.msk.msra.mxu1 %vm87_vm0, %v2739_v5  ;;  %v2737_v9 = vld [vmem:[%s4846_s1 + $0x60] sm:$0xff]  ;;  %v2736_v10 = vld [vmem:[%s4846_s1 + $0x58] sm:$0xff]  ;;  %v61_v11 = vld [vmem:[%s4846_s1 + $0x8] sm:$0xff] }
   0x5   :  { %121 = vmatpush1.msra.mxu0 %v64_v4  ;;  %288 = vmatprep.subr.mxu1 %v2738_v7  ;;  %v3273_v12 = vld [vmem:[%s4845_s0] sm:$0xff]  ;;  %v2735_v14 = vld [vmem:[%s4846_s1 + $0x50] sm:$0xff]  ;;  %v3284_v15 = vld [vmem:[%s4845_s0 + $0x8] sm:$0xff] }
   0x6   :  { %122 = vmatprep.subr.mxu0 %v63_v6  ;;  %289 = vmatpush1.msra.mxu1 %v2737_v9  ;;  %v60_v13 = vld [vmem:[%s4846_s1] sm:$0xff]  ;;  %v2734_v16 = vld [vmem:[%s4846_s1 + $0x48] sm:$0xff]  ;;  %v221_v17 = vrot.slane %v3273_v12, 1  ;;  %v222_v18 = vrot.slane %v3284_v15, 1  ;;  %v3294_v19 = vld [vmem:[%s4845_s0 + $0x10] sm:$0xff] }
   0x7   :  { %123 = vmatpush1.msra.mxu0 %v62_v8  ;;  %290 = vmatprep.subr.mxu1 %v2736_v10  ;;  %v2733_v21 = vld [vmem:[%s4846_s1 + $0x40] sm:$0xff]  ;;  %v224_v23 = vrot.slane %v3294_v19, 1  ;;  %v3307_v24 = vld [vmem:[%s4845_s0 + $0x18] sm:$0xf]  ;;  %v2755_v27 = vld [vmem:[%s4846_s1 + $0xb0] sm:$0xf] }
   0x8   :  { %124 = vmatprep.subr.mxu0 %v61_v11  ;;  %291 = vmatpush1.msra.mxu1 %v2735_v14  ;;  %v223_v22 = vsel %vm220_vm1, %v221_v17, %v222_v18  ;;  %v2756_v25 = vld [vmem:[%s4846_s1 + $0xb8] sm:$0xf]  ;;  %v226_v29 = vrot.slane %v3307_v24, 1  ;;  %v2754_v30 = vld [vmem:[%s4846_s1 + $0xa8] sm:$0xff]  ;;  %v3333_v31 = vld [vmem:[%s4845_s0 + $0x20] sm:$0xff] }
   0x9   :  { %125 = vmatpush1.msra.mxu0 %v60_v13  ;;  %292 = vmatprep.subr.mxu1 %v2734_v16  ;;  %v2772_v26 = vld [vmem:[%s4846_s1 + $0xf8] sm:$0xf]  ;;  %v225_v28 = vsel %vm220_vm1, %v222_v18, %v224_v23  ;;  %v3338_v32 = vld [vmem:[%s4845_s0 + $0x28] sm:$0xff]  ;;  %v2753_v33 = vld [vmem:[%s4846_s1 + $0xa0] sm:$0xff]  ;;  %v228_v37 = vrot.slane %v3333_v31, 1 }
   0xa   :  { %2727 = vmatmul.mubr.msk.f32.vlgmr.msra.gmra.mxu0 %vm68_vm2, %v3273_v12  ;;  %293 = vmatpush1.msra.mxu1 %v2733_v21  ;;  %v2771_v34 = vld [vmem:[%s4846_s1 + $0xf0] sm:$0xf]  ;;  %v2752_v35 = vld [vmem:[%s4846_s1 + $0x98] sm:$0xff]  ;;  %v227_v36 = vsel %vm220_vm1, %v224_v23, %v226_v29  ;;  %v229_v38 = vrot.slane %v3338_v32, 1  ;;  %v2770_v39 = vld [vmem:[%s4846_s1 + $0xe8] sm:$0xff] }
   0xb   :  { %2743 = vmatmul.mubr.msk.f32.vlgmr.msra.gmra.mxu1 %vm68_vm2, %v223_v22  ;;  %164 = vmatprep.mubr.f32.mxu0 %v4861_v20  ;;  %v3365_v40 = vld [vmem:[%s4845_s0 + $0x30] sm:$0xff] }
   0xc   :  { %332 = vmatprep.mubr.f32.mxu1 %v4861_v20  ;;  %2757 = vmatprep.subr.msk.mxu0 %vm87_vm0, %v2756_v25  ;;  %v2751_v41 = vld [vmem:[%s4846_s1 + $0x90] sm:$0xff] }
   0xd   :  { %2773 = vmatprep.subr.msk.mxu1 %vm87_vm0, %v2772_v26  ;;  %2758 = vmatpush1.msk.msra.mxu0 %vm87_vm0, %v2755_v27 }
   0xe   :  { %2728 = vmatmul.mubr.msk.f32.gmra.mxu0 %vm68_vm2, %v3284_v15  ;;  %443 = vmatprep.subr.mxu0 %v2754_v30 }
   0xf   :  { %170 = vmatprep.mubr.f32.mxu0 %v4861_v20  ;;  %2744 = vmatmul.mubr.msk.f32.gmra.mxu1 %vm68_vm2, %v225_v28 }
  0x10   :  { %338 = vmatprep.mubr.f32.mxu1 %v4861_v20  ;;  %444 = vmatpush1.msra.mxu0 %v2753_v33 }
  0x11   :  { %2774 = vmatpush1.msk.msra.mxu1 %vm87_vm0, %v2771_v34 }
  0x12   :  { %2729 = vmatmul.mubr.msk.f32.gmra.mxu0 %vm68_vm2, %v3294_v19 }
  0x13   :  { %20 = vsyncpa [#allocation3], 0  ;;  %176 = vmatprep.mubr.f32.mxu0 %v4861_v20  ;;  %445 = vmatprep.subr.mxu0 %v2752_v35  ;;  %v2769_v42 = vld [vmem:[%s4846_s1 + $0xe0] sm:$0xff]  ;;  %v2750_v43 = vld [vmem:[%s4846_s1 + $0x88] sm:$0xff]  ;;  %v230_v44 = vsel %vm220_vm1, %v228_v37, %v229_v38  ;;  %v231_v45 = vrot.slane %v3365_v40, 1  ;;  %v376_v55 = vrot.slane %v3273_v12, 2 }
  0x14   :  { %2745 = vmatmul.mubr.msk.f32.gmra.mxu1 %vm68_vm2, %v227_v36  ;;  %598 = vmatprep.subr.mxu1 %v2770_v39  ;;  %v2768_v46 = vld [vmem:[%s4846_s1 + $0xd8] sm:$0xff]  ;;  %v2749_v48 = vld [vmem:[%s4846_s1 + $0x80] sm:$0xff]  ;;  %v2767_v49 = vld [vmem:[%s4846_s1 + $0xd0] sm:$0xff]  ;;  %v377_v56 = vrot.slane %v3284_v15, 2  ;;  %vm375_vm3 = vcmask 1045504   ;;  %v531_v57 = vrot.slane %v3273_v12, 3 }
  0x15   :  { %344 = vmatprep.mubr.f32.mxu1 %v4861_v20  ;;  %446 = vmatpush1.msra.mxu0 %v2751_v41  ;;  %v3390_v47 = vld [vmem:[%s4845_s0 + $0x38] sm:$0xf]  ;;  %v2766_v50 = vld [vmem:[%s4846_s1 + $0xc8] sm:$0xff]  ;;  %v232_v51 = vsel %vm220_vm1, %v229_v38, %v231_v45  ;;  %v2765_v54 = vld [vmem:[%s4846_s1 + $0xc0] sm:$0xff]  ;;  %v532_v59 = vrot.slane %v3284_v15, 3  ;;  %vm530_vm4 = vcmask 1044480  }
  0x16   :  { %2730 = vmatmul.mubr.msk.f32.gmra.mxu0 %vm68_vm2, %v3333_v31  ;;  %599 = vmatpush1.msra.mxu1 %v2769_v42  ;;  %v233_v52 = vrot.slane %v3390_v47, 1  ;;  %v2788_v53 = vld [vmem:[%s4846_s1 + $0x138] sm:$0xf]  ;;  %v378_v60 = vsel %vm375_vm3, %v376_v55, %v377_v56  ;;  %v379_v61 = vrot.slane %v3294_v19, 2  ;;  %v2787_v62 = vld [vmem:[%s4846_s1 + $0x130] sm:$0xf] }
  0x17   :  { %182 = vmatprep.mubr.f32.mxu0 %v4861_v20  ;;  %447 = vmatprep.subr.mxu0 %v2750_v43  ;;  %v533_v63 = vsel %vm530_vm4, %v531_v57, %v532_v59  ;;  %v534_v0 = vrot.slane %v3294_v19, 3  ;;  %v2786_v1 = vld [vmem:[%s4846_s1 + $0x128] sm:$0xff]  ;;  %v2785_v2 = vld [vmem:[%s4846_s1 + $0x120] sm:$0xff]  ;;  %v381_v4 = vrot.slane %v3307_v24, 2  ;;  %v2784_v5 = vld [vmem:[%s4846_s1 + $0x118] sm:$0xff]  ;;  %v536_v8 = vrot.slane %v3307_v24, 3 }
  0x18   :  { %2746 = vmatmul.mubr.msk.f32.gmra.mxu1 %vm68_vm2, %v230_v44  ;;  %600 = vmatprep.subr.mxu1 %v2768_v46  ;;  %v234_v58 = vsel %vm220_vm1, %v231_v45, %v233_v52  ;;  %v380_v3 = vsel %vm375_vm3, %v377_v56, %v379_v61  ;;  %v2783_v6 = vld [vmem:[%s4846_s1 + $0x110] sm:$0xff]  ;;  %v2782_v9 = vld [vmem:[%s4846_s1 + $0x108] sm:$0xff]  ;;  %v2781_v10 = vld [vmem:[%s4846_s1 + $0x100] sm:$0xff]  ;;  %v383_v13 = vrot.slane %v3333_v31, 2  ;;  %v384_v14 = vrot.slane %v3338_v32, 2  ;;  %s3147_s29 = smov 112  }
  0x19   :  { %350 = vmatprep.mubr.f32.mxu1 %v4861_v20  ;;  %448 = vmatpush1.msra.mxu0 %v2749_v48  ;;  %v535_v7 = vsel %vm530_vm4, %v532_v59, %v534_v0  ;;  %v382_v11 = vsel %vm375_vm3, %v379_v61, %v381_v4  ;;  %v537_v16 = vsel %vm530_vm4, %v534_v0, %v536_v8  ;;  %v538_v17 = vrot.slane %v3333_v31, 3  ;;  %v1050_v44 = vld [vmem:[%s4849_s4 + $0x68] sm:$0xff]  ;;  %v1049_v45 = vld [vmem:[%s4849_s4 + $0x60] sm:$0xff]  ;;  %v1048_v46 = vld [vmem:[%s4849_s4 + $0x58] sm:$0xff]  ;;  %s3148_s30 = smov 32  }
  0x1a   :  { %2731 = vmatmul.mubr.msk.f32.gmra.mxu0 %vm68_vm2, %v3338_v32  ;;  %601 = vmatpush1.msra.mxu1 %v2767_v49  ;;  %v539_v18 = vrot.slane %v3338_v32, 3  ;;  %v385_v21 = vsel %vm375_vm3, %v383_v13, %v384_v14  ;;  %v386_v22 = vrot.slane %v3365_v40, 2  ;;  %v541_v25 = vrot.slane %v3365_v40, 3  ;;  %v1046_v48 = vld [vmem:[%s4849_s4 + $0x48] sm:$0xff]  ;;  %v1045_v49 = vld [vmem:[%s4849_s4 + $0x40] sm:$0xff]  ;;  %v1039_v56 = vld [vmem:[%s4849_s4 + $0x10] sm:$0xff] }
  0x1b   :  { %188 = vmatprep.mubr.f32.mxu0 %v4861_v20  ;;  %602 = vmatprep.subr.mxu1 %v2766_v50  ;;  %v388_v27 = vrot.slane %v3390_v47, 2  ;;  %v543_v29 = vrot.slane %v3390_v47, 3  ;;  %v685_v30 = vrot.slane %v3273_v12, 4  ;;  %v686_v34 = vrot.slane %v3284_v15, 4  ;;  %v1044_v50 = vld [vmem:[%s4849_s4 + $0x38] sm:$0xff]  ;;  %v1042_v52 = vld [vmem:[%s4849_s4 + $0x28] sm:$0xff] }
  0x1c   :  { %2747 = vmatmul.mubr.msk.f32.gmra.mxu1 %vm68_vm2, %v232_v51  ;;  %2789 = vmatprep.subr.msk.mxu0 %vm87_vm0, %v2788_v53  ;;  %v540_v23 = vsel %vm530_vm4, %v538_v17, %v539_v18  ;;  %v387_v26 = vsel %vm375_vm3, %v384_v14, %v386_v22  ;;  %v542_v28 = vsel %vm530_vm4, %v539_v18, %v541_v25  ;;  %v688_v12 = vrot.slane %v3294_v19, 4  ;;  %v1043_v51 = vld [vmem:[%s4849_s4 + $0x30] sm:$0xff]  ;;  %v1041_v53 = vld [vmem:[%s4849_s4 + $0x20] sm:$0xff]  ;;  %v1038_v59 = vld [vmem:[%s4849_s4 + $0x8] sm:$0xff] }
  0x1d   :  { %356 = vmatprep.mubr.f32.mxu1 %v4861_v20  ;;  %603 = vmatpush1.msra.mxu1 %v2765_v54  ;;  %v389_v33 = vsel %vm375_vm3, %v386_v22, %v388_v27  ;;  %v544_v35 = vsel %vm530_vm4, %v541_v25, %v543_v29  ;;  %v687_v36 = vsel %vm87_vm0, %v685_v30, %v686_v34  ;;  %v690_v37 = vrot.slane %v3307_v24, 4  ;;  %v1040_v54 = vld [vmem:[%s4849_s4 + $0x18] sm:$0xff]  ;;  %v1065_v4 = vld [vmem:[%s4849_s4 + $0xe0] sm:$0xff]  ;;  %v1062_v14 = vld [vmem:[%s4849_s4 + $0xc8] sm:$0xff] }
  0x1e   :  { %2732 = vmatmul.mubr.msk.f32.gmra.mxu0 %vm68_vm2, %v3365_v40  ;;  %v689_v15 = vsel %vm87_vm0, %v686_v34, %v688_v12  ;;  %v692_v19 = vrot.slane %v3333_v31, 4  ;;  %v693_v39 = vrot.slane %v3338_v32, 4  ;;  %v695_v42 = vrot.slane %v3365_v40, 4  ;;  %v1052_v32 = vld [vmem:[%s4849_s4 + $0x78] sm:$0xff]  ;;  %v1051_v40 = vld [vmem:[%s4849_s4 + $0x70] sm:$0xff] }
  0x1f   :  { %481 = vmatprep.mubr.f32.mxu0 %v4861_v20  ;;  %v691_v38 = vsel %vm87_vm0, %v688_v12, %v690_v37  ;;  %v697_v43 = vrot.slane %v3390_v47, 4  ;;  %v1047_v47 = vld [vmem:[%s4849_s4 + $0x50] sm:$0xff]  ;;  %vm842_vm5 = vcmask 392192   ;;  %vm1067_vm6 = vcmask 916480  }
  0x20   :  { %2748 = vmatmul.mubr.msk.f32.gmra.mxu1 %vm68_vm2, %v234_v58  ;;  %v694_v41 = vsel %vm87_vm0, %v692_v19, %v693_v39  ;;  %v696_v24 = vsel %vm87_vm0, %v693_v39, %v695_v42  ;;  %vm1410_vm7 = vcmask 1042432   ;;  %vm1411_vm8 = vcmask 1046532  }
  0x21   :  { %636 = vmatprep.mubr.f32.mxu1 %v4861_v20  ;;  %v698_v31 = vsel %vm87_vm0, %v695_v42, %v697_v43  ;;  %vm1313_vm9 = vcmask 982016   ;;  %vm4118_vm10 = vmor %vm1410_vm7, %vm1411_vm8  ;;  %vm1545_vm11 = vcmask 1041408   ;;  %vm1546_vm12 = vcmask 1045508  }
  0x22   :  { %2759 = vmatmul.mubr.msk.f32.vlgmr.msra.gmra.mxu0 %vm68_vm2, %v378_v60  ;;  %vm4293_vm13 = vmor %vm1545_vm11, %vm1546_vm12  ;;  %vm1680_vm14 = vcmask 1040384   ;;  %vm1681_vm15 = vcmask 1044484   ;;  %vm2107_vm3 = vcmask 261120   ;;  %vm3145_vm4 = vmmov 0  }
  0x23   :  { %487 = vmatprep.mubr.f32.mxu0 %v4861_v20  ;;  %2790 = vmatpush1.msk.msra.mxu0 %vm87_vm0, %v2787_v62  ;;  %v1037_v62 = vld [vmem:[%s4849_s4] sm:$0xff]  ;;  %vm4346_vm1 = vmor %vm1680_vm14, %vm1681_vm15  ;;  %vm2374_vm7 = vcmask 523264   ;;  %vm2323_vm8 = vcmask 654336  }
  0x24   :  { %2775 = vmatmul.mubr.msk.f32.vlgmr.msra.gmra.mxu1 %vm68_vm2, %v533_v63  ;;  %752 = vmatprep.subr.mxu0 %v2786_v1  ;;  %v1066_v1 = vld [vmem:[%s4849_s4 + $0xe8] sm:$0xff] }
  0x25   :  { %642 = vmatprep.mubr.f32.mxu1 %v4861_v20  ;;  %753 = vmatpush1.msra.mxu0 %v2785_v2 }
  0x26   :  { %2760 = vmatmul.mubr.msk.f32.gmra.mxu0 %vm68_vm2, %v380_v3  ;;  %754 = vmatprep.subr.mxu0 %v2784_v5 }
  0x27   :  { %493 = vmatprep.mubr.f32.mxu0 %v4861_v20  ;;  %755 = vmatpush1.msra.mxu0 %v2783_v6 }
  0x28   :  { %2776 = vmatmul.mubr.msk.f32.gmra.mxu1 %vm68_vm2, %v535_v7  ;;  %756 = vmatprep.subr.mxu0 %v2782_v9  ;;  %v1064_v7 = vld [vmem:[%s4849_s4 + $0xd8] sm:$0xff] }
  0x29   :  { %648 = vmatprep.mubr.f32.mxu1 %v4861_v20  ;;  %757 = vmatpush1.msra.mxu0 %v2781_v10  ;;  %v1063_v10 = vld [vmem:[%s4849_s4 + $0xd0] sm:$0xff] }
  0x2a   :  { %2761 = vmatmul.mubr.msk.f32.gmra.mxu0 %vm68_vm2, %v382_v11  ;;  %1077 = vmatprep.subr.mxu0 %v4861_v20 }
  0x2b   :  { %499 = vmatprep.mubr.f32.mxu0 %v4861_v20 }
  0x2c   :  { %2777 = vmatmul.mubr.msk.f32.gmra.mxu1 %vm68_vm2, %v537_v16 }
  0x2d   :  { %654 = vmatprep.mubr.f32.mxu1 %v4861_v20 }
  0x2e   :  { %2762 = vmatmul.mubr.msk.f32.gmra.mxu0 %vm68_vm2, %v385_v21 }
  0x2f   :  { %505 = vmatprep.mubr.f32.mxu0 %v4861_v20 }
  0x30   :  { %2778 = vmatmul.mubr.msk.f32.gmra.mxu1 %vm68_vm2, %v540_v23 }
  0x31   :  { %660 = vmatprep.mubr.f32.mxu1 %v4861_v20 }
  0x32   :  { %2763 = vmatmul.mubr.msk.f32.gmra.mxu0 %vm68_vm2, %v387_v26 }
  0x33   :  { %511 = vmatprep.mubr.f32.mxu0 %v4861_v20 }
  0x34   :  { %2779 = vmatmul.mubr.msk.f32.gmra.mxu1 %vm68_vm2, %v542_v28 }
  0x35   :  { %666 = vmatprep.mubr.f32.mxu1 %v4861_v20 }
  0x36   :  { %2764 = vmatmul.mubr.msk.f32.gmra.mxu0 %vm68_vm2, %v389_v33 }
  0x37   :  { %790 = vmatprep.mubr.f32.mxu0 %v4861_v20 }
  0x38   :  { %2780 = vmatmul.mubr.msk.f32.gmra.mxu1 %vm68_vm2, %v544_v35 }
  0x39   :  { %916 = vmatprep.mubr.f32.mxu1 %v4861_v20 }
  0x3a   :  { %2791 = vmatmul.mubr.msk.f32.vlgmr.msra.gmra.mxu0 %vm68_vm2, %v687_v36 }
  0x3b   :  { %796 = vmatprep.mubr.f32.mxu0 %v4861_v20  ;;  %1078 = vmatpush1.msra.mxu0 %v1052_v32 }
  0x3c   :  { %1079 = vmatprep.subr.mxu0 %v4861_v20 }
  0x3d   :  { %1080 = vmatpush1.msra.mxu0 %v1051_v40 }
  0x3e   :  { %2792 = vmatmul.mubr.msk.f32.gmra.mxu0 %vm68_vm2, %v689_v15  ;;  %1081 = vmatprep.subr.mxu0 %v4861_v20 }
  0x3f   :  { %802 = vmatprep.mubr.f32.mxu0 %v4861_v20  ;;  %1082 = vmatpush1.msra.mxu0 %v1050_v44 }
  0x40   :  { %1083 = vmatprep.subr.mxu0 %v4861_v20 }
  0x41   :  { %1084 = vmatpush1.msra.mxu0 %v1049_v45 }
  0x42   :  { %2793 = vmatmul.mubr.msk.f32.gmra.mxu0 %vm68_vm2, %v691_v38  ;;  %1085 = vmatprep.subr.mxu0 %v4861_v20 }
  0x43   :  { %808 = vmatprep.mubr.f32.mxu0 %v4861_v20  ;;  %1086 = vmatpush1.msra.mxu0 %v1048_v46 }
  0x44   :  { %1087 = vmatprep.subr.mxu0 %v4861_v20 }
  0x45   :  { %1088 = vmatpush1.msra.mxu0 %v1047_v47 }
  0x46   :  { %2794 = vmatmul.mubr.msk.f32.gmra.mxu0 %vm68_vm2, %v694_v41  ;;  %1089 = vmatprep.subr.mxu0 %v4861_v20 }
  0x47   :  { %814 = vmatprep.mubr.f32.mxu0 %v4861_v20  ;;  %1090 = vmatpush1.msra.mxu0 %v1046_v48 }
  0x48   :  { %1091 = vmatprep.subr.mxu0 %v4861_v20 }
  0x49   :  { %1092 = vmatpush1.msra.mxu0 %v1045_v49 }
  0x4a   :  { %2795 = vmatmul.mubr.msk.f32.gmra.mxu0 %vm68_vm2, %v696_v24  ;;  %1093 = vmatprep.subr.mxu0 %v4861_v20 }
  0x4b   :  { %820 = vmatprep.mubr.f32.mxu0 %v4861_v20  ;;  %1094 = vmatpush1.msra.mxu0 %v1044_v50 }
  0x4c   :  { %1095 = vmatprep.subr.mxu0 %v4861_v20 }
  0x4d   :  { %1096 = vmatpush1.msra.mxu0 %v1043_v51 }
  0x4e   :  { %2796 = vmatmul.mubr.msk.f32.gmra.mxu0 %vm68_vm2, %v698_v31  ;;  %1097 = vmatprep.subr.mxu0 %v4861_v20  ;;  %v196_v31 = vlaneseq  ;;  %vm1934_vm2 = vcmask 130048  }
  0x4f   :  { %1098 = vmatpush1.msra.mxu0 %v1042_v52 }
  0x50   :  { %1099 = vmatprep.subr.mxu0 %v4861_v20  ;;  %v3666_v45 = vshrl.u32 %v196_v31, 7 }
  0x51   :  { %1100 = vmatpush1.msra.mxu0 %v1041_v53  ;;  %v59_v53 = vld [vmem:[%s4847_s2] sm:$0x3] }
  0x52   :  { %1101 = vmatprep.subr.mxu0 %v4861_v20  ;;  %4873 = vst [vmem:[#allocation9_spill] sm:$0xff] %v3666_v45  ;;  %v3673_v49 = vsub.s32 1, %v3666_v45  ;;  %v3676_v50 = vsub.s32 0, %v3666_v45 }
  0x53   :  { %1102 = vmatpush1.msra.mxu0 %v1040_v54 }
  0x54   :  { %1103 = vmatprep.subr.mxu0 %v4861_v20  ;;  %4876 = vst [vmem:[#allocation12_spill] sm:$0xff] %v3673_v49  ;;  %4877 = vst [vmem:[#allocation13_spill] sm:$0xff] %v3676_v50 }
  0x55   :  { %1104 = vmatpush1.msra.mxu0 %v1039_v56  ;;  %v203_v56 = vrot.slane %v59_v53, %v3673_v49 }
  0x56   :  { %1105 = vmatprep.subr.mxu0 %v4861_v20 }
  0x57   :  { %1106 = vmatpush1.msra.mxu0 %v1038_v59  ;;  %v199_v59 = vrot.slane %v59_v53, %v3676_v50 }
  0x58   :  { %1107 = vmatprep.subr.mxu0 %v4861_v20 }
  0x59   :  { %1108 = vmatpush1.msra.mxu0 %v1037_v62 }
  0x5a   :  { %1113 = vmatprep.subr.mxu0 %v4861_v20 }
  0x5b   :  { %1114 = vmatpush2.msra.mxu0 %v1066_v1 }
  0x5c   :  { %1115 = vmatprep.subr.mxu0 %v4861_v20 }
  0x5d   :  { %1116 = vmatpush2.msra.mxu0 %v1065_v4 }
  0x5e   :  { %1117 = vmatprep.subr.mxu0 %v4861_v20 }
  0x5f   :  { %1118 = vmatpush2.msra.mxu0 %v1064_v7 }
  0x60   :  { %1119 = vmatprep.subr.mxu0 %v4861_v20 }
  0x61   :  { %1120 = vmatpush2.msra.mxu0 %v1063_v10 }
  0x62   :  { %1121 = vmatprep.subr.mxu0 %v4861_v20 }
  0x63   :  { %1122 = vmatpush2.msra.mxu0 %v1062_v14 }
  0x64   :  { %1123 = vmatprep.subr.mxu0 %v4861_v20 }
  0xca   :  { %v3574_v55 = vpop.f32.mrf.mxu0 }
  0xcb   :  { %v3582_v58 = vpop.f32.mrf.mxu1 }
  0xcc   :  { %v3580_v57 = vpop.f32.mrf.mxu0 }
  0xcd   :  { %v3590_v61 = vpop.f32.mrf.mxu1 }
  0xce   :  { %v3588_v60 = vpop.f32.mrf.mxu0 }
  0xcf   :  { %v3598_v0 = vpop.f32.mrf.mxu1 }
  0xd0   :  { %v3596_v63 = vpop.f32.mrf.mxu0 }
  0xd1   :  { %v3606_v3 = vpop.f32.mrf.mxu1 }
  0xd2   :  { %v3604_v2 = vpop.f32.mrf.mxu0 }
  0xd3   :  { %v210_v50 = vadd.f32 %v199_v59, %v3604_v2 }
  0xd4   :  { %v3612_v5 = vpop.f32.mrf.mxu0  ;;  %v3614_v6 = vpop.f32.mrf.mxu1 }
  0xd5   :  { %v211_v49 = vadd.f32 %v203_v56, %v3612_v5  ;;  %v207_v5 = vadd.f32 %v203_v56, %v3580_v57 }
  0xd6   :  { %v3620_v8 = vpop.f32.mrf.mxu0  ;;  %v3622_v9 = vpop.f32.mrf.mxu1 }
  0xd8   :  { %v180_v11 = vpop.f32.mrf.mxu0  ;;  %v3628_v13 = vpop.f32.mrf.mxu1 }
  0xda   :  { %v184_v16 = vpop.f32.mrf.mxu0  ;;  %v3634_v17 = vpop.f32.mrf.mxu1 }
  0xdb   :  { %v214_v31 = vadd.f32 %v199_v59, %v184_v16  ;;  %v209_v16 = vadd.f32 %v203_v56, %v3596_v63 }
  0xdc   :  { %v186_v18 = vpop.f32.mrf.mxu0  ;;  %v352_v21 = vpop.f32.mrf.mxu1 }
  0xdd   :  { %v215_v14 = vadd.f32 %v203_v56, %v186_v18 }
  0xde   :  { %v190_v22 = vpop.f32.mrf.mxu0  ;;  %v354_v23 = vpop.f32.mrf.mxu1 }
  0xdf   :  { %v216_v7 = vadd.f32 %v199_v59, %v190_v22 }
  0xe0   :  { %v192_v25 = vpop.f32.mrf.mxu0  ;;  %v358_v26 = vpop.f32.mrf.mxu1 }
  0xe1   :  { %v217_v4 = vadd.f32 %v203_v56, %v192_v25 }
  0xe2   :  { %v360_v27 = vpop.f32.mrf.mxu1  ;;  %v3638_v28 = vpop.f32.mrf.mxu0 }
  0xe4   :  { %v3640_v29 = vpop.f32.mrf.mxu0  ;;  %v3642_v30 = vpop.f32.mrf.mxu1 }
  0xe5   :  { %4869 = vst [vmem:[#allocation5_spill] sm:$0xff] %v3642_v30  ;;  %v373_v30 = vadd.f32 %v358_v26, %v216_v7  ;;  %v4888_v7 = vmov 0.0  }
  0xe6   :  { %v3644_v33 = vpop.f32.mrf.mxu0  ;;  %v3646_v34 = vpop.f32.mrf.mxu1 }
  0xe7   :  { %4870 = vst [vmem:[#allocation6_spill] sm:$0xff] %v3646_v34  ;;  %v372_v34 = vadd.f32 %v354_v23, %v215_v14  ;;  %v368_v23 = vadd.f32 %v3622_v9, %v211_v49  ;;  %v841_v14 = vld [vmem:[%s4848_s3 + $0x10] sm:$0xff] }
  0xe8   :  { %v3648_v35 = vpop.f32.mrf.mxu0  ;;  %v3650_v36 = vpop.f32.mrf.mxu1 }
  0xe9   :  { %4871 = vst [vmem:[#allocation7_spill] sm:$0xff] %v3650_v36 }
  0xea   :  { %v3652_v12 = vpop.f32.mrf.mxu0  ;;  %v3654_v15 = vpop.f32.mrf.mxu1 }
  0xec   :  { %v3656_v37 = vpop.f32.mrf.mxu0  ;;  %v3658_v19 = vpop.f32.mrf.mxu1 }
  0xee   :  { %v501_v38 = vpop.f32.mrf.mxu0  ;;  %v3660_v42 = vpop.f32.mrf.mxu1 }
  0xf0   :  { %v503_v39 = vpop.f32.mrf.mxu0  ;;  %v3662_v32 = vpop.f32.mrf.mxu1 }
  0xf2   :  { %v507_v41 = vpop.f32.mrf.mxu0  ;;  %v658_v46 = vpop.f32.mrf.mxu1 }
  0xf4   :  { %v509_v24 = vpop.f32.mrf.mxu0  ;;  %v662_v51 = vpop.f32.mrf.mxu1 }
  0xf6   :  { %v513_v43 = vpop.f32.mrf.mxu0  ;;  %v664_v62 = vpop.f32.mrf.mxu1 }
  0xf7   :  { %v528_v25 = vadd.f32 %v513_v43, %v373_v30  ;;  %v206_v30 = vadd.f32 %v199_v59, %v3574_v55  ;;  %v367_v43 = vadd.f32 %v3614_v6, %v210_v50 }
  0xf8   :  { %v515_v40 = vpop.f32.mrf.mxu0  ;;  %v668_v20 = vpop.f32.mrf.mxu1 }
  0xf9   :  { %v522_v57 = vadd.f32 %v3652_v12, %v367_v43  ;;  %v2811_v43 = vld [vmem:[%s4849_s4 + $0x100] sm:$0xff] }
  0xfa   :  { %v3664_v44 = vpop.f32.mrf.mxu0  ;;  %v670_v22 = vpop.f32.mrf.mxu1 }
  0xfb   :  { %4872 = vst [vmem:[#allocation8_spill] sm:$0xff] %v3664_v44  ;;  %v213_v44 = vadd.f32 %v203_v56, %v180_v11  ;;  %v527_v11 = vadd.f32 %v509_v24, %v372_v34  ;;  %v366_v34 = vadd.f32 %v3606_v3, %v209_v16  ;;  %v2822_v16 = vld [vmem:[%s4849_s4 + $0x158] sm:$0xff] }
  0xfc   :  { %v3668_v47 = vpop.f32.mrf.mxu0 }
  0xfd   :  { %4874 = vst [vmem:[#allocation10_spill] sm:$0xff] %v3668_v47  ;;  %v374_v47 = vadd.f32 %v360_v27, %v217_v4  ;;  %v370_v18 = vadd.f32 %v3634_v17, %v213_v44  ;;  %v208_v27 = vadd.f32 %v199_v59, %v3588_v60  ;;  %v523_v60 = vadd.f32 %v3656_v37, %v368_v23  ;;  %v2815_v23 = vld [vmem:[%s4849_s4 + $0x120] sm:$0xff] }
  0xfe   :  { %v3670_v48 = vpop.f32.mrf.mxu0  ;;  %v364_v44 = vadd.f32 %v3590_v61, %v207_v5  ;;  %v521_v55 = vadd.f32 %v3648_v35, %v366_v34  ;;  %v677_v35 = vadd.f32 %v3658_v19, %v522_v57  ;;  %v2816_v5 = vld [vmem:[%s4849_s4 + $0x128] sm:$0xff]  ;;  %v2837_v34 = vld [vmem:[%s4849_s4 + $0x1d0] sm:$0xff] }
  0xff   :  { %4875 = vst [vmem:[#allocation11_spill] sm:$0xff] %v3670_v48  ;;  %v212_v48 = vadd.f32 %v199_v59, %v3620_v8  ;;  %v529_v53 = vadd.f32 %v515_v40, %v374_v47  ;;  %v525_v2 = vadd.f32 %v503_v39, %v370_v18  ;;  %v683_v40 = vadd.f32 %v668_v20, %v528_v25  ;;  %v2823_v25 = vld [vmem:[%s4849_s4 + $0x160] sm:$0xff]  ;;  %v2821_v18 = vld [vmem:[%s4849_s4 + $0x150] sm:$0xff] }
 0x100   :  { %v3678_v52 = vpop.f32.mrf.mxu0  ;;  %v365_v24 = vadd.f32 %v3598_v0, %v208_v27  ;;  %v363_v20 = vadd.f32 %v3582_v58, %v206_v30  ;;  %v519_v0 = vadd.f32 %v3640_v29, %v364_v44  ;;  %v678_v12 = vadd.f32 %v3660_v42, %v523_v60  ;;  %v4882_v29 = vld [vmem:[#allocation6_spill] sm:$0xff] }
 0x101   :  { %4878 = vst [vmem:[#allocation14_spill] sm:$0xff] %v3678_v52  ;;  %v369_v8 = vadd.f32 %v3628_v13, %v212_v48  ;;  %v682_v13 = vadd.f32 %v664_v62, %v527_v11  ;;  %v680_v6 = vadd.f32 %v658_v46, %v525_v2  ;;  %v676_v58 = vadd.f32 %v3654_v15, %v521_v55  ;;  %v2802_v11 = vld [vmem:[%s4848_s3 + $0x28] sm:$0xff]  ;;  %v2814_v2 = vld [vmem:[%s4849_s4 + $0x118] sm:$0xff]  ;;  %v2833_v57 = vld [vmem:[%s4849_s4 + $0x1b0] sm:$0xff] }
 0x102   :  { %v3683_v54 = vpop.f32.mrf.mxu0  ;;  %v520_v3 = vadd.f32 %v3644_v33, %v365_v24  ;;  %v518_v61 = vadd.f32 %v3638_v28, %v363_v20  ;;  %v674_v42 = vadd.f32 %v4882_v29, %v519_v0  ;;  %v4884_v28 = vld [vmem:[#allocation5_spill] sm:$0xff]  ;;  %v4887_v59 = vld [vmem:[#allocation8_spill] sm:$0xff]  ;;  %v1059_v44 = vld [vmem:[%s4849_s4 + $0xb0] sm:$0xff] }
 0x103   :  { %4879 = vst [vmem:[#allocation15_spill] sm:$0xff] %v3683_v54  ;;  %v371_v54 = vadd.f32 %v352_v21, %v214_v31  ;;  %v684_v21 = vadd.f32 %v670_v22, %v529_v53  ;;  %v524_v63 = vadd.f32 %v501_v38, %v369_v8  ;;  %v2800_v31 = vld [vmem:[%s4848_s3 + $0x18] sm:$0xff]  ;;  %v2824_v53 = vld [vmem:[%s4849_s4 + $0x168] sm:$0xff]  ;;  %v2801_v22 = vld [vmem:[%s4848_s3 + $0x20] sm:$0xff] }
 0x104   :  { %v3687_v1 = vpop.f32.mrf.mxu0  ;;  %v4886_v56 = vld [vmem:[#allocation10_spill] sm:$0xff]  ;;  %v2819_v8 = vld [vmem:[%s4849_s4 + $0x140] sm:$0xff] }
 0x105   :  { %v526_v26 = vadd.f32 %v507_v41, %v371_v54  ;;  %v679_v37 = vadd.f32 %v3662_v32, %v524_v63  ;;  %v832_v33 = vadd.f32 %v3687_v1, %v678_v12  ;;  %v4880_v32 = vld [vmem:[#allocation7_spill] sm:$0xff]  ;;  %v828_v15 = vadd.f32 %v4886_v56, %v674_v42  ;;  %v839_v1 = vld [vmem:[%s4848_s3] sm:$0xff]  ;;  %v2820_v27 = vld [vmem:[%s4849_s4 + $0x148] sm:$0xff] }
 0x106   :  { %v810_v10 = vpop.f32.mrf.mxu0  ;;  %v675_v46 = vadd.f32 %v4880_v32, %v520_v3  ;;  %v4885_v19 = vld [vmem:[#allocation11_spill] sm:$0xff]  ;;  %v2812_v30 = vld [vmem:[%s4849_s4 + $0x108] sm:$0xff]  ;;  %v1061_v24 = vld [vmem:[%s4849_s4 + $0xc0] sm:$0xff] }
 0x107   :  { %v681_v9 = vadd.f32 %v662_v51, %v526_v26  ;;  %v2818_v26 = vld [vmem:[%s4849_s4 + $0x138] sm:$0xff]  ;;  %v2836_v60 = vld [vmem:[%s4849_s4 + $0x1c8] sm:$0xff]  ;;  %1124 = vmatpush2.msra.mxu0 %v1061_v24  ;;  %v2831_v55 = vld [vmem:[%s4849_s4 + $0x1a0] sm:$0xff] }
 0x108   :  { %v812_v45 = vpop.f32.mrf.mxu0  ;;  %v829_v54 = vadd.f32 %v4885_v19, %v675_v46  ;;  %v2810_v63 = vld [vmem:[%s4849_s4 + $0xf8] sm:$0xff]  ;;  %1125 = vmatprep.subr.mxu0 %v4888_v7  ;;  %v1057_v20 = vld [vmem:[%s4849_s4 + $0xa0] sm:$0xff]  ;;  %v2829_v3 = vld [vmem:[%s4849_s4 + $0x190] sm:$0xff] }
 0x109   :  { %v834_v48 = vadd.f32 %v812_v45, %v680_v6  ;;  %v4883_v45 = vld [vmem:[#allocation14_spill] sm:$0xff]  ;;  %v2827_v12 = vld [vmem:[%s4849_s4 + $0x180] sm:$0xff] }
 0x10a   :  { %v816_v52 = vpop.f32.mrf.mxu0  ;;  %v4881_v49 = vld [vmem:[#allocation15_spill] sm:$0xff]  ;;  %v830_v51 = vadd.f32 %v4883_v45, %v676_v58  ;;  %v1058_v6 = vld [vmem:[%s4849_s4 + $0xa8] sm:$0xff] }
 0x10b   :  { %v835_v47 = vadd.f32 %v816_v52, %v681_v9  ;;  %v831_v50 = vadd.f32 %v4881_v49, %v677_v35  ;;  %v673_v52 = vadd.f32 %v4884_v28, %v518_v61  ;;  %v1060_v9 = vld [vmem:[%s4849_s4 + $0xb8] sm:$0xff]  ;;  %v1055_v0 = vld [vmem:[%s4849_s4 + $0x90] sm:$0xff]  ;;  %v1053_v35 = vld [vmem:[%s4849_s4 + $0x80] sm:$0xff] }
 0x10c   :  { %v818_v36 = vpop.f32.mrf.mxu0  ;;  %1126 = vmatpush2.msra.mxu0 %v1060_v9  ;;  %v2826_v61 = vld [vmem:[%s4849_s4 + $0x178] sm:$0xff]  ;;  %v1310_v58 = vld [vmem:[%s4850_s5 + $0xe8] sm:$0xff]  ;;  %v2874_v56 = vld [vmem:[%s4850_s5 + $0x1d0] sm:$0xff] }
 0x10d   :  { %v836_v38 = vadd.f32 %v818_v36, %v682_v13  ;;  %v833_v36 = vadd.f32 %v810_v10, %v679_v37  ;;  %v827_v62 = vadd.f32 %v4887_v59, %v673_v52  ;;  %v840_v10 = vld [vmem:[%s4848_s3 + $0x8] sm:$0xff]  ;;  %v2835_v13 = vld [vmem:[%s4849_s4 + $0x1c0] sm:$0xff]  ;;  %1127 = vmatprep.subr.mxu0 %v4888_v7  ;;  %v1056_v37 = vld [vmem:[%s4849_s4 + $0x98] sm:$0xff] }
 0x10e   :  { %v822_v4 = vpop.f32.mrf.mxu0  ;;  %1128 = vmatpush2.msra.mxu0 %v1059_v44  ;;  %v2873_v59 = vld [vmem:[%s4850_s5 + $0x1c8] sm:$0xff]  ;;  %v2862_v24 = vld [vmem:[%s4850_s5 + $0x170] sm:$0xff]  ;;  %v2860_v44 = vld [vmem:[%s4850_s5 + $0x160] sm:$0xff] }
 0x10f   :  { %v837_v39 = vadd.f32 %v822_v4, %v683_v40  ;;  %v2817_v4 = vld [vmem:[%s4849_s4 + $0x130] sm:$0xff]  ;;  %1129 = vmatprep.subr.mxu0 %v4888_v7  ;;  %v2861_v9 = vld [vmem:[%s4850_s5 + $0x168] sm:$0xff] }
 0x110   :  { %v824_v17 = vpop.f32.mrf.mxu0  ;;  %v2809_v40 = vld [vmem:[%s4849_s4 + $0xf0] sm:$0xff]  ;;  %1130 = vmatpush2.msra.mxu0 %v1058_v6  ;;  %v2859_v6 = vld [vmem:[%s4850_s5 + $0x158] sm:$0xff] }
 0x111   :  { %v838_v41 = vadd.f32 %v824_v17, %v684_v21  ;;  %v2813_v21 = vld [vmem:[%s4849_s4 + $0x110] sm:$0xff]  ;;  %v2838_v17 = vld [vmem:[%s4849_s4 + $0x1d8] sm:$0xff]  ;;  %1131 = vmatprep.subr.mxu0 %v4888_v7 }
 0x112   :  { %1132 = vmatpush2.msra.mxu0 %v1057_v20  ;;  %v1292_v20 = vld [vmem:[%s4850_s5 + $0x58] sm:$0xff] }
 0x113   :  { %872 = vmatprep.subr.mxu1 %v838_v41  ;;  %1133 = vmatprep.subr.mxu0 %v4888_v7 }
 0x114   :  { %873 = vmatpush1.msra.mxu1 %v837_v39  ;;  %1134 = vmatpush2.msra.mxu0 %v1056_v37  ;;  %v1290_v37 = vld [vmem:[%s4850_s5 + $0x48] sm:$0xff] }
 0x115   :  { %874 = vmatprep.subr.mxu1 %v836_v38  ;;  %1135 = vmatprep.subr.mxu0 %v4888_v7 }
 0x116   :  { %875 = vmatpush1.msra.mxu1 %v835_v47  ;;  %1136 = vmatpush2.msra.mxu0 %v1055_v0  ;;  %v1288_v0 = vld [vmem:[%s4850_s5 + $0x38] sm:$0xff] }
 0x117   :  { %876 = vmatprep.subr.mxu1 %v834_v48  ;;  %1137 = vmatprep.subr.mxu0 %v4888_v7 }
 0x118   :  { %877 = vmatpush1.msra.mxu1 %v833_v36 }
 0x119   :  { %878 = vmatprep.subr.mxu1 %v832_v33 }
 0x11a   :  { %879 = vmatpush1.msra.mxu1 %v831_v50 }
 0x11b   :  { %880 = vmatprep.subr.mxu1 %v830_v51 }
 0x11c   :  { %881 = vmatpush1.msra.mxu1 %v829_v54 }
 0x11d   :  { %882 = vmatprep.subr.mxu1 %v828_v15 }
 0x11e   :  { %883 = vmatpush1.msra.mxu1 %v827_v62 }
 0x11f   :  { %2797 = vmatmul.mubr.msk.f32.vlgmr.msra.gmra.mxu1 %vm842_vm5, %v839_v1  ;;  %968 = vmatprep.subr.mxu1 %v838_v41  ;;  %v2834_v41 = vld [vmem:[%s4849_s4 + $0x1b8] sm:$0xff] }
 0x120   :  { %969 = vmatpush1.msra.mxu1 %v837_v39  ;;  %922 = vmatprep.mubr.f32.mxu1 %v4888_v7  ;;  %v2832_v39 = vld [vmem:[%s4849_s4 + $0x1a8] sm:$0xff] }
 0x121   :  { %970 = vmatprep.subr.mxu1 %v836_v38  ;;  %v2830_v38 = vld [vmem:[%s4849_s4 + $0x198] sm:$0xff] }
 0x122   :  { %971 = vmatpush1.msra.mxu1 %v835_v47  ;;  %v2828_v47 = vld [vmem:[%s4849_s4 + $0x188] sm:$0xff] }
 0x123   :  { %2798 = vmatmul.mubr.msk.f32.gmra.mxu1 %vm842_vm5, %v840_v10  ;;  %972 = vmatprep.subr.mxu1 %v834_v48  ;;  %v1054_v48 = vld [vmem:[%s4849_s4 + $0x88] sm:$0xff] }
 0x124   :  { %973 = vmatpush1.msra.mxu1 %v833_v36  ;;  %928 = vmatprep.mubr.f32.mxu1 %v4888_v7  ;;  %v2825_v36 = vld [vmem:[%s4849_s4 + $0x170] sm:$0xff] }
 0x125   :  { %974 = vmatprep.subr.mxu1 %v832_v33  ;;  %1138 = vmatpush2.msra.mxu0 %v1054_v48  ;;  %v2875_v33 = vld [vmem:[%s4850_s5 + $0x1d8] sm:$0xff]  ;;  %v1287_v48 = vld [vmem:[%s4850_s5 + $0x30] sm:$0xff] }
 0x126   :  { %975 = vmatpush1.msra.mxu1 %v831_v50  ;;  %1139 = vmatprep.subr.mxu0 %v4888_v7 }
 0x127   :  { %2799 = vmatmul.mubr.msk.f32.gmra.mxu1 %vm842_vm5, %v841_v14  ;;  %976 = vmatprep.subr.mxu1 %v830_v51 }
 0x128   :  { %977 = vmatpush1.msra.mxu1 %v829_v54  ;;  %1012 = vmatprep.mubr.f32.mxu1 %v4888_v7  ;;  %v1309_v54 = vld [vmem:[%s4850_s5 + $0xe0] sm:$0xff] }
 0x129   :  { %978 = vmatprep.subr.mxu1 %v828_v15  ;;  %1140 = vmatpush2.msra.mxu0 %v1053_v35  ;;  %v1308_v15 = vld [vmem:[%s4850_s5 + $0xd8] sm:$0xff]  ;;  %v1286_v35 = vld [vmem:[%s4850_s5 + $0x28] sm:$0xff] }
 0x12a   :  { %979 = vmatpush1.msra.mxu1 %v827_v62  ;;  %1320 = vmatprep.subr.mxu0 %v1310_v58  ;;  %v1285_v58 = vld [vmem:[%s4850_s5 + $0x20] sm:$0xff] }
 0x12b   :  { %2803 = vmatmul.mubr.msk.f32.vlgmr.msra.gmra.mxu1 %vm842_vm5, %v2800_v31  ;;  %1188 = vmatprep.subr.mxu1 %v4888_v7  ;;  %v1307_v31 = vld [vmem:[%s4850_s5 + $0xd0] sm:$0xff] }
 0x12c   :  { %1018 = vmatprep.mubr.f32.mxu1 %v4888_v7  ;;  %1189 = vmatpush1.msra.mxu1 %v2824_v53  ;;  %v2872_v53 = vld [vmem:[%s4850_s5 + $0x1c0] sm:$0xff] }
 0x12d   :  { %1190 = vmatprep.subr.mxu1 %v4888_v7 }
 0x12e   :  { %1191 = vmatpush1.msra.mxu1 %v2823_v25  ;;  %v1306_v25 = vld [vmem:[%s4850_s5 + $0xc8] sm:$0xff] }
 0x12f   :  { %2804 = vmatmul.mubr.msk.f32.gmra.mxu1 %vm842_vm5, %v2801_v22  ;;  %1192 = vmatprep.subr.mxu1 %v4888_v7  ;;  %v2871_v22 = vld [vmem:[%s4850_s5 + $0x1b8] sm:$0xff] }
 0x130   :  { %1024 = vmatprep.mubr.f32.mxu1 %v4888_v7  ;;  %1193 = vmatpush1.msra.mxu1 %v2822_v16 }
 0x131   :  { %1194 = vmatprep.subr.mxu1 %v4888_v7 }
 0x132   :  { %1195 = vmatpush1.msra.mxu1 %v2821_v18 }
 0x133   :  { %2805 = vmatmul.mubr.msk.f32.gmra.mxu1 %vm842_vm5, %v2802_v11  ;;  %1196 = vmatprep.subr.mxu1 %v4888_v7  ;;  %vm2284_vm5 = vcmask 1041409  }
 0x134   :  { %1197 = vmatpush1.msra.mxu1 %v2820_v27  ;;  %v1305_v27 = vld [vmem:[%s4850_s5 + $0xc0] sm:$0xff] }
 0x135   :  { %1198 = vmatprep.subr.mxu1 %v4888_v7 }
 0x136   :  { %1199 = vmatpush1.msra.mxu1 %v2819_v8  ;;  %v2870_v8 = vld [vmem:[%s4850_s5 + $0x1b0] sm:$0xff] }
 0x137   :  { %1200 = vmatprep.subr.mxu1 %v4888_v7 }
 0x138   :  { %1201 = vmatpush1.msra.mxu1 %v2818_v26  ;;  %v1304_v26 = vld [vmem:[%s4850_s5 + $0xb8] sm:$0xff] }
 0x139   :  { %1202 = vmatprep.subr.mxu1 %v4888_v7 }
 0x13a   :  { %1203 = vmatpush1.msra.mxu1 %v2817_v4  ;;  %v2869_v4 = vld [vmem:[%s4850_s5 + $0x1a8] sm:$0xff] }
 0x13b   :  { %1204 = vmatprep.subr.mxu1 %v4888_v7 }
 0x13c   :  { %1205 = vmatpush1.msra.mxu1 %v2816_v5  ;;  %v1303_v5 = vld [vmem:[%s4850_s5 + $0xb0] sm:$0xff] }
 0x13d   :  { %1206 = vmatprep.subr.mxu1 %v4888_v7 }
 0x13e   :  { %1207 = vmatpush1.msra.mxu1 %v2815_v23  ;;  %v2868_v23 = vld [vmem:[%s4850_s5 + $0x1a0] sm:$0xff] }
 0x13f   :  { %1208 = vmatprep.subr.mxu1 %v4888_v7 }
 0x140   :  { %1209 = vmatpush1.msra.mxu1 %v2814_v2  ;;  %v1302_v2 = vld [vmem:[%s4850_s5 + $0xa8] sm:$0xff] }
 0x141   :  { %1210 = vmatprep.subr.mxu1 %v4888_v7 }
 0x142   :  { %1211 = vmatpush1.msra.mxu1 %v2813_v21  ;;  %v2867_v21 = vld [vmem:[%s4850_s5 + $0x198] sm:$0xff] }
 0x143   :  { %1212 = vmatprep.subr.mxu1 %v4888_v7 }
 0x144   :  { %1213 = vmatpush1.msra.mxu1 %v2812_v30  ;;  %v1301_v30 = vld [vmem:[%s4850_s5 + $0xa0] sm:$0xff] }
 0x145   :  { %1214 = vmatprep.subr.mxu1 %v4888_v7 }
 0x146   :  { %1215 = vmatpush1.msra.mxu1 %v2811_v43  ;;  %v2866_v43 = vld [vmem:[%s4850_s5 + $0x190] sm:$0xff] }
 0x147   :  { %1216 = vmatprep.subr.mxu1 %v4888_v7 }
 0x148   :  { %1217 = vmatpush1.msra.mxu1 %v2810_v63  ;;  %v1300_v63 = vld [vmem:[%s4850_s5 + $0x98] sm:$0xff] }
 0x149   :  { %1218 = vmatprep.subr.mxu1 %v4888_v7 }
 0x14a   :  { %1219 = vmatpush1.msra.mxu1 %v2809_v40  ;;  %v2865_v40 = vld [vmem:[%s4850_s5 + $0x188] sm:$0xff] }
 0x14b   :  { %1224 = vmatprep.subr.mxu1 %v4888_v7 }
 0x14c   :  { %1225 = vmatpush2.msra.mxu1 %v2838_v17  ;;  %v1299_v17 = vld [vmem:[%s4850_s5 + $0x90] sm:$0xff] }
 0x14d   :  { %1226 = vmatprep.subr.mxu1 %v4888_v7 }
 0x14e   :  { %1227 = vmatpush2.msra.mxu1 %v2837_v34  ;;  %v2864_v34 = vld [vmem:[%s4850_s5 + $0x180] sm:$0xff] }
 0x14f   :  { %1228 = vmatprep.subr.mxu1 %v4888_v7 }
 0x150   :  { %1229 = vmatpush2.msra.mxu1 %v2836_v60  ;;  %v1298_v60 = vld [vmem:[%s4850_s5 + $0x88] sm:$0xff] }
 0x151   :  { %1230 = vmatprep.subr.mxu1 %v4888_v7 }
 0x152   :  { %1231 = vmatpush2.msra.mxu1 %v2835_v13  ;;  %v2863_v13 = vld [vmem:[%s4850_s5 + $0x178] sm:$0xff] }
 0x153   :  { %1232 = vmatprep.subr.mxu1 %v4888_v7 }
 0x154   :  { %1233 = vmatpush2.msra.mxu1 %v2834_v41  ;;  %v1297_v41 = vld [vmem:[%s4850_s5 + $0x80] sm:$0xff] }
 0x155   :  { %1234 = vmatprep.subr.mxu1 %v4888_v7 }
 0x156   :  { %1235 = vmatpush2.msra.mxu1 %v2833_v57  ;;  %v1296_v57 = vld [vmem:[%s4850_s5 + $0x78] sm:$0xff] }
 0x157   :  { %1236 = vmatprep.subr.mxu1 %v4888_v7 }
 0x158   :  { %1237 = vmatpush2.msra.mxu1 %v2832_v39  ;;  %v1295_v39 = vld [vmem:[%s4850_s5 + $0x70] sm:$0xff] }
 0x159   :  { %1238 = vmatprep.subr.mxu1 %v4888_v7 }
 0x15a   :  { %1239 = vmatpush2.msra.mxu1 %v2831_v55  ;;  %v1294_v55 = vld [vmem:[%s4850_s5 + $0x68] sm:$0xff] }
 0x15b   :  { %1240 = vmatprep.subr.mxu1 %v4888_v7 }
 0x15c   :  { %1241 = vmatpush2.msra.mxu1 %v2830_v38  ;;  %v1293_v38 = vld [vmem:[%s4850_s5 + $0x60] sm:$0xff] }
 0x15d   :  { %1242 = vmatprep.subr.mxu1 %v4888_v7 }
 0x15e   :  { %1243 = vmatpush2.msra.mxu1 %v2829_v3  ;;  %v1291_v3 = vld [vmem:[%s4850_s5 + $0x50] sm:$0xff] }
 0x15f   :  { %1244 = vmatprep.subr.mxu1 %v4888_v7 }
 0x160   :  { %1245 = vmatpush2.msra.mxu1 %v2828_v47  ;;  %v1289_v47 = vld [vmem:[%s4850_s5 + $0x40] sm:$0xff] }
 0x161   :  { %1246 = vmatprep.subr.mxu1 %v4888_v7 }
 0x162   :  { %1247 = vmatpush2.msra.mxu1 %v2827_v12  ;;  %v2858_v12 = vld [vmem:[%s4850_s5 + $0x150] sm:$0xff] }
 0x163   :  { %1248 = vmatprep.subr.mxu1 %v4888_v7 }
 0x164   :  { %1249 = vmatpush2.msra.mxu1 %v2826_v61  ;;  %v2857_v61 = vld [vmem:[%s4850_s5 + $0x148] sm:$0xff] }
 0x165   :  { %1250 = vmatprep.subr.mxu1 %v4888_v7 }
 0x166   :  { %1251 = vmatpush2.msra.mxu1 %v2825_v36  ;;  %v2856_v36 = vld [vmem:[%s4850_s5 + $0x140] sm:$0xff] }
 0x167   :  { %1466 = vmatprep.subr.mxu1 %v2875_v33  ;;  %v2855_v33 = vld [vmem:[%s4850_s5 + $0x138] sm:$0xff] }
 0x1df   :  { %v918_v32 = vpop.f32.mrf.mxu1 }
 0x1e1   :  { %v920_v46 = vpop.f32.mrf.mxu1 }
 0x1e3   :  { %v924_v49 = vpop.f32.mrf.mxu1 }
 0x1e5   :  { %v926_v50 = vpop.f32.mrf.mxu1 }
 0x1e7   :  { %v930_v29 = vpop.f32.mrf.mxu1 }
 0x1e9   :  { %v932_v42 = vpop.f32.mrf.mxu1 }
 0x1eb   :  { %v1014_v45 = vpop.f32.mrf.mxu1 }
 0x1ec   :  { %v1031_v52 = vmax.f32 %v918_v32, %v1014_v45  ;;  %v1284_v32 = vld [vmem:[%s4850_s5 + $0x18] sm:$0xff]  ;;  %v1281_v45 = vld [vmem:[%s4850_s5] sm:$0xff] }
 0x1ed   :  { %v1016_v51 = vpop.f32.mrf.mxu1 }
 0x1ee   :  { %v1032_v28 = vmax.f32 %v920_v46, %v1016_v51  ;;  %v2854_v46 = vld [vmem:[%s4850_s5 + $0x130] sm:$0xff]  ;;  %v2851_v51 = vld [vmem:[%s4850_s5 + $0x118] sm:$0xff] }
 0x1ef   :  { %v1020_v19 = vpop.f32.mrf.mxu1 }
 0x1f0   :  { %2806 = vmatprep.mubr.msk.f32.mxu0 %vm1067_vm6, %v1032_v28  ;;  %2839 = vmatprep.mubr.msk.f32.mxu1 %vm1067_vm6, %v1032_v28  ;;  %v1033_v10 = vmax.f32 %v924_v49, %v1020_v19  ;;  %v1283_v49 = vld [vmem:[%s4850_s5 + $0x10] sm:$0xff]  ;;  %v2849_v19 = vld [vmem:[%s4850_s5 + $0x108] sm:$0xff] }
 0x1f1   :  { %v1022_v62 = vpop.f32.mrf.mxu1  ;;  %1142 = vmatmul.mubr.f32.vlgmr.msra.gmra.mxu0 %v1031_v52  ;;  %1253 = vmatmul.mubr.f32.vlgmr.msra.gmra.mxu1 %v1031_v52  ;;  %v2850_v28 = vld [vmem:[%s4850_s5 + $0x110] sm:$0xff]  ;;  %v2909_v52 = vld [vmem:[%s4850_s5 + $0x2c8] sm:$0xff] }
 0x1f2   :  { %v1034_v1 = vmax.f32 %v926_v50, %v1022_v62  ;;  %1321 = vmatpush1.msra.mxu0 %v1309_v54  ;;  %1467 = vmatpush1.msra.mxu1 %v2874_v56  ;;  %v2853_v50 = vld [vmem:[%s4850_s5 + $0x128] sm:$0xff]  ;;  %v2848_v54 = vld [vmem:[%s4850_s5 + $0x100] sm:$0xff]  ;;  %v2847_v56 = vld [vmem:[%s4850_s5 + $0xf8] sm:$0xff] }
 0x1f3   :  { %v1026_v14 = vpop.f32.mrf.mxu1  ;;  %1322 = vmatprep.subr.mxu0 %v1308_v15  ;;  %1468 = vmatprep.subr.mxu1 %v2873_v59  ;;  %v2846_v15 = vld [vmem:[%s4850_s5 + $0xf0] sm:$0xff]  ;;  %v2943_v59 = vld [vmem:[%s4850_s5 + $0x3b8] sm:$0xff] }
 0x1f4   :  { %2807 = vmatprep.mubr.msk.f32.mxu0 %vm1067_vm6, %v1034_v1  ;;  %2840 = vmatprep.mubr.msk.f32.mxu1 %vm1067_vm6, %v1034_v1  ;;  %v1035_v11 = vmax.f32 %v930_v29, %v1026_v14  ;;  %v1282_v29 = vld [vmem:[%s4850_s5 + $0x8] sm:$0xff] }
 0x1f5   :  { %v1028_v16 = vpop.f32.mrf.mxu1  ;;  %1147 = vmatmul.mubr.f32.gmra.mxu0 %v1033_v10  ;;  %1258 = vmatmul.mubr.f32.gmra.mxu1 %v1033_v10 }
 0x1f6   :  { %v1036_v18 = vmax.f32 %v932_v42, %v1028_v16  ;;  %1323 = vmatpush1.msra.mxu0 %v1307_v31  ;;  %1469 = vmatpush1.msra.mxu1 %v2872_v53  ;;  %v2852_v42 = vld [vmem:[%s4850_s5 + $0x120] sm:$0xff] }
 0x1f7   :  { %1324 = vmatprep.subr.mxu0 %v1306_v25  ;;  %1470 = vmatprep.subr.mxu1 %v2871_v22 }
 0x1f8   :  { %2808 = vmatprep.mubr.msk.f32.mxu0 %vm1067_vm6, %v1036_v18  ;;  %2841 = vmatprep.mubr.msk.f32.mxu1 %vm1067_vm6, %v1036_v18 }
 0x1f9   :  { %1152 = vmatmul.mubr.f32.gmra.mxu0 %v1035_v11  ;;  %1263 = vmatmul.mubr.f32.gmra.mxu1 %v1035_v11 }
 0x1fa   :  { %1325 = vmatpush1.msra.mxu0 %v1305_v27  ;;  %1471 = vmatpush1.msra.mxu1 %v2870_v8 }
 0x1fb   :  { %1326 = vmatprep.subr.mxu0 %v1304_v26  ;;  %1472 = vmatprep.subr.mxu1 %v2869_v4  ;;  %v2908_v4 = vld [vmem:[%s4850_s5 + $0x2c0] sm:$0xff] }
 0x1fc   :  { %1327 = vmatpush1.msra.mxu0 %v1303_v5  ;;  %1473 = vmatpush1.msra.mxu1 %v2868_v23 }
 0x1fd   :  { %1328 = vmatprep.subr.mxu0 %v1302_v2  ;;  %1474 = vmatprep.subr.mxu1 %v2867_v21  ;;  %v2907_v21 = vld [vmem:[%s4850_s5 + $0x2b8] sm:$0xff] }
 0x1fe   :  { %1329 = vmatpush1.msra.mxu0 %v1301_v30  ;;  %1475 = vmatpush1.msra.mxu1 %v2866_v43  ;;  %v2925_v30 = vld [vmem:[%s4850_s5 + $0x328] sm:$0xff] }
 0x1ff   :  { %1330 = vmatprep.subr.mxu0 %v1300_v63  ;;  %1476 = vmatprep.subr.mxu1 %v2865_v40  ;;  %v2906_v63 = vld [vmem:[%s4850_s5 + $0x2b0] sm:$0xff] }
 0x200   :  { %1331 = vmatpush1.msra.mxu0 %v1299_v17  ;;  %1477 = vmatpush1.msra.mxu1 %v2864_v34 }
 0x201   :  { %1332 = vmatprep.subr.mxu0 %v1298_v60  ;;  %1478 = vmatprep.subr.mxu1 %v2863_v13  ;;  %v2905_v13 = vld [vmem:[%s4850_s5 + $0x2a8] sm:$0xff] }
 0x202   :  { %1333 = vmatpush1.msra.mxu0 %v1297_v41  ;;  %1479 = vmatpush1.msra.mxu1 %v2862_v24  ;;  %v2904_v24 = vld [vmem:[%s4850_s5 + $0x2a0] sm:$0xff] }
 0x203   :  { %1334 = vmatprep.subr.mxu0 %v1296_v57  ;;  %1480 = vmatprep.subr.mxu1 %v2861_v9 }
 0x204   :  { %1335 = vmatpush1.msra.mxu0 %v1295_v39  ;;  %1481 = vmatpush1.msra.mxu1 %v2860_v44  ;;  %v2903_v39 = vld [vmem:[%s4850_s5 + $0x298] sm:$0xff] }
 0x205   :  { %1336 = vmatprep.subr.mxu0 %v1294_v55  ;;  %1482 = vmatprep.subr.mxu1 %v2859_v6 }
 0x206   :  { %1337 = vmatpush1.msra.mxu0 %v1293_v38  ;;  %1382 = vmatprep.mubr.f32.mxu0 %v4888_v7  ;;  %v2942_v38 = vld [vmem:[%s4850_s5 + $0x3b0] sm:$0xff] }
 0x207   :  { %1338 = vmatprep.subr.mxu0 %v1292_v20  ;;  %1528 = vmatprep.mubr.f32.mxu1 %v4888_v7  ;;  %v2902_v20 = vld [vmem:[%s4850_s5 + $0x290] sm:$0xff] }
 0x208   :  { %1339 = vmatpush1.msra.mxu0 %v1291_v3  ;;  %1483 = vmatpush1.msra.mxu1 %v2858_v12  ;;  %v2941_v3 = vld [vmem:[%s4850_s5 + $0x3a8] sm:$0xff]  ;;  %v2940_v12 = vld [vmem:[%s4850_s5 + $0x3a0] sm:$0xff] }
 0x209   :  { %1340 = vmatprep.subr.mxu0 %v1290_v37  ;;  %1484 = vmatprep.subr.mxu1 %v2857_v61  ;;  %v2900_v61 = vld [vmem:[%s4850_s5 + $0x280] sm:$0xff] }
 0x20a   :  { %1341 = vmatpush1.msra.mxu0 %v1289_v47  ;;  %1485 = vmatpush1.msra.mxu1 %v2856_v36  ;;  %v2899_v36 = vld [vmem:[%s4850_s5 + $0x278] sm:$0xff] }
 0x20b   :  { %1342 = vmatprep.subr.mxu0 %v1288_v0  ;;  %1486 = vmatprep.subr.mxu1 %v2855_v33  ;;  %v2901_v0 = vld [vmem:[%s4850_s5 + $0x288] sm:$0xff] }
 0x20c   :  { %1343 = vmatpush1.msra.mxu0 %v1287_v48  ;;  %1487 = vmatpush1.msra.mxu1 %v2854_v46 }
 0x20d   :  { %1344 = vmatprep.subr.mxu0 %v1286_v35  ;;  %1488 = vmatprep.subr.mxu1 %v2853_v50  ;;  %v2939_v35 = vld [vmem:[%s4850_s5 + $0x398] sm:$0xff]  ;;  %v2937_v50 = vld [vmem:[%s4850_s5 + $0x388] sm:$0xff] }
 0x20e   :  { %1345 = vmatpush1.msra.mxu0 %v1285_v58  ;;  %1489 = vmatpush1.msra.mxu1 %v2852_v42  ;;  %v2938_v58 = vld [vmem:[%s4850_s5 + $0x390] sm:$0xff] }
 0x20f   :  { %1346 = vmatprep.subr.mxu0 %v1284_v32  ;;  %1490 = vmatprep.subr.mxu1 %v2851_v51  ;;  %v2897_v51 = vld [vmem:[%s4850_s5 + $0x268] sm:$0xff] }
 0x210   :  { %1347 = vmatpush1.msra.mxu0 %v1283_v49  ;;  %1491 = vmatpush1.msra.mxu1 %v2850_v28  ;;  %v2898_v49 = vld [vmem:[%s4850_s5 + $0x270] sm:$0xff]  ;;  %v2936_v28 = vld [vmem:[%s4850_s5 + $0x380] sm:$0xff] }
 0x211   :  { %1348 = vmatprep.subr.mxu0 %v1282_v29  ;;  %1492 = vmatprep.subr.mxu1 %v2849_v19  ;;  %v2935_v19 = vld [vmem:[%s4850_s5 + $0x378] sm:$0xff] }
 0x212   :  { %1349 = vmatpush1.msra.mxu0 %v1281_v45  ;;  %1493 = vmatpush1.msra.mxu1 %v2848_v54  ;;  %v2895_v54 = vld [vmem:[%s4850_s5 + $0x258] sm:$0xff] }
 0x213   :  { %1601 = vmatprep.subr.mxu0 %v2909_v52  ;;  %1494 = vmatprep.subr.mxu1 %v2847_v56  ;;  %v2896_v52 = vld [vmem:[%s4850_s5 + $0x260] sm:$0xff]  ;;  %v2934_v56 = vld [vmem:[%s4850_s5 + $0x370] sm:$0xff] }
 0x214   :  { %1495 = vmatpush1.msra.mxu1 %v2846_v15  ;;  %v2894_v15 = vld [vmem:[%s4850_s5 + $0x250] sm:$0xff] }
 0x215   :  { %1736 = vmatprep.subr.mxu1 %v2943_v59  ;;  %v2933_v59 = vld [vmem:[%s4850_s5 + $0x368] sm:$0xff] }
 0x2b1   :  { %v1143_v62 = vpop.f32.mrf.mxu0  ;;  %v1254_v1 = vpop.f32.mrf.mxu1 }
 0x2b2   :  { %v1268_v10 = vmax.f32 %v1143_v62, %v1254_v1  ;;  %v2893_v62 = vld [vmem:[%s4850_s5 + $0x248] sm:$0xff]  ;;  %v2932_v1 = vld [vmem:[%s4850_s5 + $0x360] sm:$0xff] }
 0x2b3   :  { %v1145_v14 = vpop.f32.mrf.mxu0  ;;  %v1256_v31 = vpop.f32.mrf.mxu1 }
 0x2b4   :  { %v4101_v53 = vmax.f32 %v1268_v10, 0.0  ;;  %v2892_v10 = vld [vmem:[%s4850_s5 + $0x240] sm:$0xff]  ;;  %v2931_v14 = vld [vmem:[%s4850_s5 + $0x358] sm:$0xff] }
 0x2b5   :  { %v1148_v25 = vpop.f32.mrf.mxu0  ;;  %v1259_v22 = vpop.f32.mrf.mxu1  ;;  %v2891_v31 = vld [vmem:[%s4850_s5 + $0x238] sm:$0xff] }
 0x2b6   :  { %v4105_v16 = vcombine.high %v4101_v53, %v4101_v53  ;;  %v1269_v18 = vmax.f32 %v1148_v25, %v1259_v22  ;;  %v2844_v40 = vrot.slane %v4101_v53, 9  ;;  %v2930_v25 = vld [vmem:[%s4850_s5 + $0x350] sm:$0xff] }
 0x2b7   :  { %v1150_v11 = vpop.f32.mrf.mxu0  ;;  %v1261_v27 = vpop.f32.mrf.mxu1  ;;  %v2890_v22 = vld [vmem:[%s4850_s5 + $0x230] sm:$0xff] }
 0x2b8   :  { %v1311_v8 = vcombine.low %v4101_v53, %v4105_v16  ;;  %v1415_v26 = vrot.slane %v4105_v16, 5  ;;  %v4113_v5 = vmax.f32 %v1269_v18, 0.0  ;;  %v2929_v18 = vld [vmem:[%s4850_s5 + $0x348] sm:$0xff]  ;;  %v1550_v11 = vrot.slane %v4105_v16, 6 }
 0x2b9   :  { %v1153_v23 = vpop.f32.mrf.mxu0  ;;  %v1264_v2 = vpop.f32.mrf.mxu1  ;;  %v2889_v27 = vld [vmem:[%s4850_s5 + $0x228] sm:$0xff] }
 0x2ba   :  { %v1417_v43 = vrot.slane %v1415_v26, 4  ;;  %2842 = vmatmul.mubr.msk.f32.vlgmr.msra.gmra.mxu0 %vm1313_vm9, %v1311_v8  ;;  %v1418_v17 = vrot.slane %v4113_v5, 5  ;;  %v1270_v41 = vmax.f32 %v1153_v23, %v1264_v2  ;;  %v1416_v57 = vsel %vm4118_vm10, %v2844_v40, %v1415_v26  ;;  %v2928_v8 = vld [vmem:[%s4850_s5 + $0x340] sm:$0xff]  ;;  %v2887_v23 = vld [vmem:[%s4850_s5 + $0x218] sm:$0xff]  ;;  %v2926_v2 = vld [vmem:[%s4850_s5 + $0x330] sm:$0xff] }
 0x2bb   :  { %1602 = vmatpush1.msra.mxu0 %v2908_v4  ;;  %v1155_v34 = vpop.f32.mrf.mxu0  ;;  %v1266_v60 = vpop.f32.mrf.mxu1  ;;  %1388 = vmatprep.mubr.f32.mxu0 %v4888_v7  ;;  %v4144_v44 = vcombine.high %v4113_v5, %v4113_v5  ;;  %v2888_v26 = vld [vmem:[%s4850_s5 + $0x220] sm:$0xff]  ;;  %v2927_v4 = vld [vmem:[%s4850_s5 + $0x338] sm:$0xff]  ;;  %v2885_v40 = vld [vmem:[%s4850_s5 + $0x208] sm:$0xff] }
 0x2bc   :  { %1603 = vmatprep.subr.mxu0 %v2907_v21  ;;  %v1419_v9 = vsel %vm4118_vm10, %v1417_v43, %v1418_v17  ;;  %v4146_v55 = vmax.f32 %v1270_v41, 0.0  ;;  %v2886_v21 = vld [vmem:[%s4850_s5 + $0x210] sm:$0xff]  ;;  %v1552_v43 = vrot.slane %v1550_v11, 4  ;;  %v2924_v17 = vld [vmem:[%s4850_s5 + $0x320] sm:$0xff]  ;;  %v2923_v60 = vld [vmem:[%s4850_s5 + $0x318] sm:$0xff] }
 0x2bd   :  { %1604 = vmatpush1.msra.mxu0 %v2906_v63  ;;  %v1458_v6 = vcombine.low %v1416_v57, %v1419_v9  ;;  %v2845_v33 = vrot.slane %v4144_v44, 9  ;;  %v1553_v63 = vrot.slane %v4113_v5, 6  ;;  %v2884_v34 = vld [vmem:[%s4850_s5 + $0x200] sm:$0xff]  ;;  %v2922_v41 = vld [vmem:[%s4850_s5 + $0x310] sm:$0xff]  ;;  %v1685_v9 = vrot.slane %v4105_v16, 7  ;;  %v2953_v57 = vld [vmem:[%s4850_s5 + $0x3f8] sm:$0xff] }
 0x2be   :  { %1605 = vmatprep.subr.mxu0 %v2905_v13  ;;  %v4159_v37 = vcombine.high %v4146_v55, %v4146_v55  ;;  %v1312_v47 = vcombine.low %v4144_v44, %v4146_v55  ;;  %v1422_v48 = vrot.slane %v4146_v55, 5  ;;  %v2883_v13 = vld [vmem:[%s4850_s5 + $0x1f8] sm:$0xff] }
 0x2bf   :  { %1606 = vmatpush1.msra.mxu0 %v2904_v24  ;;  %2876 = vmatmul.mubr.msk.f32.vlgmr.msra.gmra.mxu1 %vm1313_vm9, %v1458_v6  ;;  %v1557_v24 = vrot.slane %v4146_v55, 6  ;;  %v2921_v6 = vld [vmem:[%s4850_s5 + $0x308] sm:$0xff] }
 0x2c0   :  { %1607 = vmatprep.subr.mxu0 %v2903_v39  ;;  %1737 = vmatpush1.msra.mxu1 %v2942_v38  ;;  %v1424_v32 = vrot.slane %v1422_v48, 4  ;;  %v1425_v46 = vrot.slane %v4159_v37, 5  ;;  %v1423_v29 = vsel %vm4118_vm10, %v2845_v33, %v1422_v48  ;;  %v2882_v39 = vld [vmem:[%s4850_s5 + $0x1f0] sm:$0xff]  ;;  %v2878_v38 = vrot.slane %v4101_v53, 10  ;;  %v2919_v48 = vld [vmem:[%s4850_s5 + $0x2f8] sm:$0xff] }
 0x2c1   :  { %1608 = vmatpush1.msra.mxu0 %v2902_v20  ;;  %1738 = vmatprep.subr.mxu1 %v2941_v3  ;;  %v1554_v20 = vsel %vm4293_vm13, %v1552_v43, %v1553_v63  ;;  %v2881_v3 = vld [vmem:[%s4850_s5 + $0x1e8] sm:$0xff]  ;;  %v2962_v43 = vld [vmem:[%s4850_s5 + $0x440] sm:$0xff]  ;;  %v2961_v63 = vld [vmem:[%s4850_s5 + $0x438] sm:$0xff] }
 0x2c2   :  { %2843 = vmatmul.mubr.msk.f32.gmra.mxu0 %vm1313_vm9, %v1312_v47  ;;  %1609 = vmatprep.subr.mxu0 %v2901_v0  ;;  %v1426_v42 = vsel %vm4118_vm10, %v1424_v32, %v1425_v46  ;;  %v2920_v47 = vld [vmem:[%s4850_s5 + $0x300] sm:$0xff]  ;;  %v2918_v32 = vld [vmem:[%s4850_s5 + $0x2f0] sm:$0xff]  ;;  %v2975_v46 = vld [vmem:[%s4850_s5 + $0x4a8] sm:$0xff] }
 0x2c3   :  { %1739 = vmatpush1.msra.mxu1 %v2940_v12  ;;  %1610 = vmatpush1.msra.mxu0 %v2900_v61  ;;  %v1459_v45 = vcombine.low %v1423_v29, %v1426_v42  ;;  %v2880_v0 = vld [vmem:[%s4850_s5 + $0x1e0] sm:$0xff]  ;;  %v1551_v12 = vsel %vm4293_vm13, %v2878_v38, %v1550_v11  ;;  %v1559_v61 = vrot.slane %v1557_v24, 4  ;;  %v2913_v11 = vrot.slane %v4144_v44, 11  ;;  %v2949_v38 = vld [vmem:[%s4850_s5 + $0x3d8] sm:$0xff] }
 0x2c4   :  { %1740 = vmatprep.subr.mxu1 %v2939_v35  ;;  %1611 = vmatprep.subr.mxu0 %v2899_v36  ;;  %v1560_v35 = vrot.slane %v4159_v37, 6  ;;  %v1687_v36 = vrot.slane %v1685_v9, 4  ;;  %v1593_v33 = vcombine.low %v1551_v12, %v1554_v20  ;;  %v2974_v29 = vld [vmem:[%s4850_s5 + $0x4a0] sm:$0xff]  ;;  %v2948_v20 = vld [vmem:[%s4850_s5 + $0x3d0] sm:$0xff]  ;;  %v1847_v12 = vcombine.low %v4146_v55, %v4159_v37 }
 0x2c5   :  { %1741 = vmatpush1.msra.mxu1 %v2938_v58  ;;  %1534 = vmatprep.mubr.f32.mxu1 %v4888_v7  ;;  %v1688_v58 = vrot.slane %v4113_v5, 7  ;;  %v2916_v42 = vld [vmem:[%s4850_s5 + $0x2e0] sm:$0xff] }
 0x2c6   :  { %1612 = vmatpush1.msra.mxu0 %v2898_v49  ;;  %1742 = vmatprep.subr.mxu1 %v2937_v50  ;;  %v1692_v49 = vrot.slane %v4146_v55, 7  ;;  %v2917_v50 = vld [vmem:[%s4850_s5 + $0x2e8] sm:$0xff]  ;;  %v2994_v55 = vld [vmem:[%s4853_s8 + $0x100] sm:$0xff] }
 0x2c7   :  { %2877 = vmatmul.mubr.msk.f32.gmra.mxu1 %vm1313_vm9, %v1459_v45  ;;  %1613 = vmatprep.subr.mxu0 %v2897_v51  ;;  %v2973_v45 = vld [vmem:[%s4850_s5 + $0x498] sm:$0xff] }
 0x2c8   :  { %1743 = vmatpush1.msra.mxu1 %v2936_v28  ;;  %1614 = vmatpush1.msra.mxu0 %v2896_v52  ;;  %v2915_v28 = vld [vmem:[%s4850_s5 + $0x2d8] sm:$0xff]  ;;  %v2879_v52 = vrot.slane %v4144_v44, 10  ;;  %v1693_v44 = vsel %vm4346_vm1, %v2913_v11, %v1692_v49 }
 0x2c9   :  { %1744 = vmatprep.subr.mxu1 %v2935_v19  ;;  %1615 = vmatprep.subr.mxu0 %v2895_v54  ;;  %v1561_v19 = vsel %vm4293_vm13, %v1559_v61, %v1560_v35  ;;  %v2912_v54 = vrot.slane %v4101_v53, 11  ;;  %v2992_v61 = vld [vmem:[%s4853_s8 + $0xf0] sm:$0xff]  ;;  %v2991_v35 = vld [vmem:[%s4853_s8 + $0xe8] sm:$0xff] }
 0x2ca   :  { %1745 = vmatpush1.msra.mxu1 %v2934_v56  ;;  %1616 = vmatpush1.msra.mxu0 %v2894_v15  ;;  %v1689_v56 = vsel %vm4346_vm1, %v1687_v36, %v1688_v58  ;;  %v2972_v15 = vld [vmem:[%s4850_s5 + $0x490] sm:$0xff]  ;;  %v1558_v53 = vsel %vm4293_vm13, %v2879_v52, %v1557_v24  ;;  %v2954_v24 = vld [vmem:[%s4850_s5 + $0x400] sm:$0xff]  ;;  %v2989_v58 = vld [vmem:[%s4853_s8 + $0xd8] sm:$0xff] }
 0x2cb   :  { %1746 = vmatprep.subr.mxu1 %v2933_v59  ;;  %1617 = vmatprep.subr.mxu0 %v2893_v62  ;;  %v2914_v59 = vld [vmem:[%s4850_s5 + $0x2d0] sm:$0xff]  ;;  %v1694_v62 = vrot.slane %v1692_v49, 4  ;;  %v2990_v36 = vld [vmem:[%s4853_s8 + $0xe0] sm:$0xff]  ;;  %v2985_v49 = vld [vmem:[%s4853_s8 + $0xb8] sm:$0xff] }
 0x2cc   :  { %1747 = vmatpush1.msra.mxu1 %v2932_v1  ;;  %1618 = vmatpush1.msra.mxu0 %v2892_v10  ;;  %v1695_v1 = vrot.slane %v4159_v37, 7  ;;  %v1686_v10 = vsel %vm4346_vm1, %v2912_v54, %v1685_v9  ;;  %v2952_v9 = vld [vmem:[%s4850_s5 + $0x3f0] sm:$0xff]  ;;  %v2993_v37 = vld [vmem:[%s4853_s8 + $0xf8] sm:$0xff] }
 0x2cd   :  { %1748 = vmatprep.subr.mxu1 %v2931_v14  ;;  %1619 = vmatprep.subr.mxu0 %v2891_v31  ;;  %v1594_v14 = vcombine.low %v1558_v53, %v1561_v19  ;;  %v2971_v31 = vld [vmem:[%s4850_s5 + $0x488] sm:$0xff] }
 0x2ce   :  { %1749 = vmatpush1.msra.mxu1 %v2930_v25  ;;  %1620 = vmatpush1.msra.mxu0 %v2890_v22  ;;  %v1728_v25 = vcombine.low %v1686_v10, %v1689_v56  ;;  %v2970_v22 = vld [vmem:[%s4850_s5 + $0x480] sm:$0xff] }
 0x2cf   :  { %1750 = vmatprep.subr.mxu1 %v2929_v18  ;;  %1621 = vmatprep.subr.mxu0 %v2889_v27  ;;  %v2969_v18 = vld [vmem:[%s4850_s5 + $0x478] sm:$0xff]  ;;  %v1696_v27 = vsel %vm4346_vm1, %v1694_v62, %v1695_v1  ;;  %v1280_v10 = vld [vmem:[%s4851_s6] sm:$0x3] }
 0x2d0   :  { %1751 = vmatpush1.msra.mxu1 %v2928_v8  ;;  %1622 = vmatpush1.msra.mxu0 %v2888_v26  ;;  %v2968_v8 = vld [vmem:[%s4850_s5 + $0x470] sm:$0xff]  ;;  %v2967_v26 = vld [vmem:[%s4850_s5 + $0x468] sm:$0xff] }
 0x2d1   :  { %1752 = vmatprep.subr.mxu1 %v2927_v4  ;;  %1623 = vmatprep.subr.mxu0 %v2887_v23  ;;  %v1729_v4 = vcombine.low %v1693_v44, %v1696_v27  ;;  %v2966_v23 = vld [vmem:[%s4850_s5 + $0x460] sm:$0xff] }
 0x2d2   :  { %1753 = vmatpush1.msra.mxu1 %v2926_v2  ;;  %1624 = vmatpush1.msra.mxu0 %v2886_v21  ;;  %v2965_v2 = vld [vmem:[%s4850_s5 + $0x458] sm:$0xff]  ;;  %v2964_v21 = vld [vmem:[%s4850_s5 + $0x450] sm:$0xff] }
 0x2d3   :  { %1754 = vmatprep.subr.mxu1 %v2925_v30  ;;  %1625 = vmatprep.subr.mxu0 %v2885_v40  ;;  %v2963_v30 = vld [vmem:[%s4850_s5 + $0x448] sm:$0xff]  ;;  %v2960_v40 = vld [vmem:[%s4850_s5 + $0x430] sm:$0xff] }
 0x2d4   :  { %1755 = vmatpush1.msra.mxu1 %v2924_v17  ;;  %1626 = vmatpush1.msra.mxu0 %v2884_v34  ;;  %v2959_v17 = vld [vmem:[%s4850_s5 + $0x428] sm:$0xff]  ;;  %v2958_v34 = vld [vmem:[%s4850_s5 + $0x420] sm:$0xff] }
 0x2d5   :  { %1756 = vmatprep.subr.mxu1 %v2923_v60  ;;  %1627 = vmatprep.subr.mxu0 %v2883_v13  ;;  %v2957_v60 = vld [vmem:[%s4850_s5 + $0x418] sm:$0xff]  ;;  %v2956_v13 = vld [vmem:[%s4850_s5 + $0x410] sm:$0xff] }
 0x2d6   :  { %1757 = vmatpush1.msra.mxu1 %v2922_v41  ;;  %1628 = vmatpush1.msra.mxu0 %v2882_v39  ;;  %v2955_v41 = vld [vmem:[%s4850_s5 + $0x408] sm:$0xff] }
 0x2d7   :  { %1758 = vmatprep.subr.mxu1 %v2921_v6  ;;  %1629 = vmatprep.subr.mxu0 %v2881_v3  ;;  %v2951_v39 = vld [vmem:[%s4850_s5 + $0x3e8] sm:$0xff]  ;;  %v2950_v6 = vld [vmem:[%s4850_s5 + $0x3e0] sm:$0xff] }
 0x2d8   :  { %1759 = vmatpush1.msra.mxu1 %v2920_v47  ;;  %1630 = vmatpush1.msra.mxu0 %v2880_v0  ;;  %v2947_v3 = vld [vmem:[%s4850_s5 + $0x3c8] sm:$0xff]  ;;  %v2946_v47 = vld [vmem:[%s4850_s5 + $0x3c0] sm:$0xff]  ;;  %v1846_v0 = vcombine.low %v4105_v16, %v4113_v5  ;;  %v2996_v16 = vld [vmem:[%s4853_s8 + $0x110] sm:$0xff] }
 0x2d9   :  { %1663 = vmatprep.mubr.f32.mxu0 %v4888_v7  ;;  %1760 = vmatprep.subr.mxu1 %v2919_v48  ;;  %v2997_v48 = vld [vmem:[%s4853_s8 + $0x118] sm:$0xff]  ;;  %v2995_v5 = vld [vmem:[%s4853_s8 + $0x108] sm:$0xff] }
 0x2da   :  { %2910 = vmatmul.mubr.msk.f32.vlgmr.msra.gmra.mxu0 %vm1313_vm9, %v1593_v33  ;;  %1761 = vmatpush1.msra.mxu1 %v2918_v32  ;;  %v2988_v33 = vld [vmem:[%s4853_s8 + $0xd0] sm:$0xff]  ;;  %v2987_v32 = vld [vmem:[%s4853_s8 + $0xc8] sm:$0xff] }
 0x2db   :  { %1854 = vmatprep.subr.mxu0 %v2975_v46  ;;  %1762 = vmatprep.subr.mxu1 %v2917_v50  ;;  %v2986_v46 = vld [vmem:[%s4853_s8 + $0xc0] sm:$0xff]  ;;  %v2984_v50 = vld [vmem:[%s4853_s8 + $0xb0] sm:$0xff] }
 0x2dc   :  { %1855 = vmatpush1.msra.mxu0 %v2974_v29  ;;  %1763 = vmatpush1.msra.mxu1 %v2916_v42  ;;  %v2983_v29 = vld [vmem:[%s4853_s8 + $0xa8] sm:$0xff] }
 0x2dd   :  { %1856 = vmatprep.subr.mxu0 %v2973_v45  ;;  %1669 = vmatprep.mubr.f32.mxu0 %v4888_v7 }
 0x2de   :  { %1764 = vmatprep.subr.mxu1 %v2915_v28  ;;  %1857 = vmatpush1.msra.mxu0 %v2972_v15 }
 0x2df   :  { %1765 = vmatpush1.msra.mxu1 %v2914_v59  ;;  %2911 = vmatmul.mubr.msk.f32.gmra.mxu0 %vm1313_vm9, %v1594_v14  ;;  %v4895_v14 = vld [vmem:[#allocation12_spill] sm:$0xff] }
 0x2e0   :  { %1798 = vmatprep.mubr.f32.mxu1 %v4888_v7  ;;  %1858 = vmatprep.subr.mxu0 %v2971_v31  ;;  %v1403_v31 = vrot.slane %v1280_v10, %v4895_v14 }
 0x2e1   :  { %2944 = vmatmul.mubr.msk.f32.vlgmr.msra.gmra.mxu1 %vm1313_vm9, %v1728_v25  ;;  %1859 = vmatpush1.msra.mxu0 %v2970_v22  ;;  %v4896_v25 = vld [vmem:[#allocation13_spill] sm:$0xff] }
 0x2e2   :  { %1804 = vmatprep.mubr.f32.mxu1 %v4888_v7  ;;  %1860 = vmatprep.subr.mxu0 %v2969_v18  ;;  %v1399_v22 = vrot.slane %v1280_v10, %v4896_v25 }
 0x2e3   :  { %1916 = vmatprep.mubr.f32.mxu0 %v4888_v7  ;;  %1861 = vmatpush1.msra.mxu0 %v2968_v8 }
 0x2e4   :  { %1862 = vmatprep.subr.mxu0 %v2967_v26 }
 0x2e5   :  { %2945 = vmatmul.mubr.msk.f32.gmra.mxu1 %vm1313_vm9, %v1729_v4  ;;  %1863 = vmatpush1.msra.mxu0 %v2966_v23 }
 0x2e6   :  { %2002 = vmatprep.mubr.f32.mxu1 %v4888_v7  ;;  %1864 = vmatprep.subr.mxu0 %v2965_v2 }
 0x2e7   :  { %1865 = vmatpush1.msra.mxu0 %v2964_v21 }
 0x2e8   :  { %1866 = vmatprep.subr.mxu0 %v2963_v30 }
 0x2e9   :  { %1867 = vmatpush1.msra.mxu0 %v2962_v43 }
 0x2ea   :  { %1868 = vmatprep.subr.mxu0 %v2961_v63 }
 0x2eb   :  { %1869 = vmatpush1.msra.mxu0 %v2960_v40 }
 0x2ec   :  { %1870 = vmatprep.subr.mxu0 %v2959_v17 }
 0x2ed   :  { %1871 = vmatpush1.msra.mxu0 %v2958_v34 }
 0x2ee   :  { %1872 = vmatprep.subr.mxu0 %v2957_v60 }
 0x2ef   :  { %1873 = vmatpush1.msra.mxu0 %v2956_v13 }
 0x2f0   :  { %1874 = vmatprep.subr.mxu0 %v2955_v41 }
 0x2f1   :  { %1875 = vmatpush1.msra.mxu0 %v2954_v24 }
 0x2f2   :  { %1876 = vmatprep.subr.mxu0 %v2953_v57 }
 0x2f3   :  { %1877 = vmatpush1.msra.mxu0 %v2952_v9 }
 0x2f4   :  { %1878 = vmatprep.subr.mxu0 %v2951_v39 }
 0x2f5   :  { %1879 = vmatpush1.msra.mxu0 %v2950_v6 }
 0x2f6   :  { %1880 = vmatprep.subr.mxu0 %v2949_v38 }
 0x2f7   :  { %1881 = vmatpush1.msra.mxu0 %v2948_v20 }
 0x2f8   :  { %1882 = vmatprep.subr.mxu0 %v2947_v3 }
 0x2f9   :  { %1883 = vmatpush1.msra.mxu0 %v2946_v47  ;;  %v1933_v47 = vld [vmem:[%s4852_s7] sm:$0xff] }
 0x2fa   :  { %2976 = vmatmul.mubr.msk.f32.vlgmr.msra.gmra.mxu0 %vm1313_vm9, %v1846_v0  ;;  %2202 = vmatprep.subr.mxu0 %v4888_v7  ;;  %v2979_v0 = vld [vmem:[%s4852_s7 + $0x8] sm:$0xff] }
 0x2fb   :  { %1922 = vmatprep.mubr.f32.mxu0 %v4888_v7  ;;  %2203 = vmatpush1.msra.mxu0 %v2997_v48  ;;  %v2101_v48 = vld [vmem:[%s4853_s8 + $0x70] sm:$0xff] }
 0x2fc   :  { %2204 = vmatprep.subr.mxu0 %v4888_v7 }
 0x2fd   :  { %2205 = vmatpush1.msra.mxu0 %v2996_v16  ;;  %v2100_v16 = vld [vmem:[%s4853_s8 + $0x68] sm:$0xff] }
 0x2fe   :  { %2977 = vmatmul.mubr.msk.f32.gmra.mxu0 %vm1313_vm9, %v1847_v12  ;;  %2206 = vmatprep.subr.mxu0 %v4888_v7  ;;  %v2102_v12 = vld [vmem:[%s4853_s8 + $0x78] sm:$0xff]  ;;  %vm2697_vm9 = vcmask 74752  }
 0x2ff   :  { %2207 = vmatpush1.msra.mxu0 %v2995_v5  ;;  %v2099_v5 = vld [vmem:[%s4853_s8 + $0x60] sm:$0xff] }
 0x300   :  { %2208 = vmatprep.subr.mxu0 %v4888_v7 }
 0x301   :  { %2209 = vmatpush1.msra.mxu0 %v2994_v55  ;;  %v2098_v55 = vld [vmem:[%s4853_s8 + $0x58] sm:$0xff] }
 0x302   :  { %2210 = vmatprep.subr.mxu0 %v4888_v7 }
 0x303   :  { %2211 = vmatpush1.msra.mxu0 %v2993_v37  ;;  %v2097_v37 = vld [vmem:[%s4853_s8 + $0x50] sm:$0xff] }
 0x304   :  { %2212 = vmatprep.subr.mxu0 %v4888_v7 }
 0x305   :  { %2213 = vmatpush1.msra.mxu0 %v2992_v61  ;;  %v2096_v61 = vld [vmem:[%s4853_s8 + $0x48] sm:$0xff] }
 0x306   :  { %2214 = vmatprep.subr.mxu0 %v4888_v7 }
 0x307   :  { %2215 = vmatpush1.msra.mxu0 %v2991_v35  ;;  %v2095_v35 = vld [vmem:[%s4853_s8 + $0x40] sm:$0xff] }
 0x308   :  { %2216 = vmatprep.subr.mxu0 %v4888_v7 }
 0x309   :  { %2217 = vmatpush1.msra.mxu0 %v2990_v36  ;;  %v2094_v36 = vld [vmem:[%s4853_s8 + $0x38] sm:$0xff] }
 0x30a   :  { %2218 = vmatprep.subr.mxu0 %v4888_v7 }
 0x30b   :  { %2219 = vmatpush1.msra.mxu0 %v2989_v58  ;;  %v2093_v58 = vld [vmem:[%s4853_s8 + $0x30] sm:$0xff] }
 0x30c   :  { %2220 = vmatprep.subr.mxu0 %v4888_v7 }
 0x30d   :  { %2221 = vmatpush1.msra.mxu0 %v2988_v33  ;;  %v2092_v33 = vld [vmem:[%s4853_s8 + $0x28] sm:$0xff] }
 0x30e   :  { %2222 = vmatprep.subr.mxu0 %v4888_v7 }
 0x30f   :  { %2223 = vmatpush1.msra.mxu0 %v2987_v32  ;;  %v2091_v32 = vld [vmem:[%s4853_s8 + $0x20] sm:$0xff] }
 0x310   :  { %2224 = vmatprep.subr.mxu0 %v4888_v7 }
 0x311   :  { %2225 = vmatpush1.msra.mxu0 %v2986_v46  ;;  %v2090_v46 = vld [vmem:[%s4853_s8 + $0x18] sm:$0xff] }
 0x312   :  { %2226 = vmatprep.subr.mxu0 %v4888_v7 }
 0x313   :  { %2227 = vmatpush1.msra.mxu0 %v2985_v49  ;;  %v2089_v49 = vld [vmem:[%s4853_s8 + $0x10] sm:$0xff] }
 0x314   :  { %2228 = vmatprep.subr.mxu0 %v4888_v7 }
 0x315   :  { %2229 = vmatpush1.msra.mxu0 %v2984_v50  ;;  %v2088_v50 = vld [vmem:[%s4853_s8 + $0x8] sm:$0xff] }
 0x316   :  { %2230 = vmatprep.subr.mxu0 %v4888_v7 }
 0x317   :  { %2231 = vmatpush1.msra.mxu0 %v2983_v29  ;;  %v2087_v29 = vld [vmem:[%s4853_s8] sm:$0xff] }
 0x318   :  { %2232 = vmatprep.subr.mxu0 %v4888_v7 }
 0x37a   :  { %v1384_v42 = vpop.f32.mrf.mxu0 }
 0x37b   :  { %v1406_v23 = vadd.f32 %v1399_v22, %v1384_v42  ;;  %v2982_v42 = vld [vmem:[%s4853_s8 + $0xa0] sm:$0xff] }
 0x37c   :  { %v1386_v45 = vpop.f32.mrf.mxu0  ;;  %2233 = vmatpush1.msra.mxu0 %v2982_v42 }
 0x37d   :  { %v1407_v44 = vadd.f32 %v1403_v31, %v1386_v45  ;;  %2258 = vmatprep.subr.mxu0 %v4888_v7  ;;  %v2106_v45 = vld [vmem:[%s4853_s8 + $0x98] sm:$0xff] }
 0x37f   :  { %v1530_v51 = vpop.f32.mrf.mxu1 }
 0x380   :  { %v1541_v40 = vadd.f32 %v1530_v51, %v1406_v23  ;;  %v3001_v51 = vld [vmem:[%s4853_s8 + $0x138] sm:$0xff]  ;;  %v2339_v23 = vld [vmem:[%s4854_s9 + $0x60] sm:$0xff] }
 0x381   :  { %v1532_v52 = vpop.f32.mrf.mxu1  ;;  %2259 = vmatpush2.msra.mxu0 %v3001_v51 }
 0x382   :  { %v1390_v28 = vpop.f32.mrf.mxu0  ;;  %v1542_v43 = vadd.f32 %v1532_v52, %v1407_v44  ;;  %2260 = vmatprep.subr.mxu0 %v4888_v7  ;;  %v3000_v52 = vld [vmem:[%s4853_s8 + $0x130] sm:$0xff]  ;;  %v2355_v44 = vld [vmem:[%s4854_s9 + $0xe0] sm:$0xff] }
 0x383   :  { %v1408_v8 = vadd.f32 %v1399_v22, %v1390_v28  ;;  %v2105_v28 = vld [vmem:[%s4853_s8 + $0x90] sm:$0xff]  ;;  %2261 = vmatpush2.msra.mxu0 %v3000_v52  ;;  %v2358_v22 = vld [vmem:[%s4854_s9 + $0xf8] sm:$0xff] }
 0x384   :  { %v1392_v19 = vpop.f32.mrf.mxu0  ;;  %2262 = vmatprep.subr.mxu0 %v4888_v7 }
 0x385   :  { %v1409_v27 = vadd.f32 %v1403_v31, %v1392_v19  ;;  %v2104_v19 = vld [vmem:[%s4853_s8 + $0x88] sm:$0xff] }
 0x387   :  { %v1536_v54 = vpop.f32.mrf.mxu1 }
 0x388   :  { %v1543_v2 = vadd.f32 %v1536_v54, %v1408_v8  ;;  %v2999_v54 = vld [vmem:[%s4853_s8 + $0x128] sm:$0xff] }
 0x389   :  { %v1538_v15 = vpop.f32.mrf.mxu1  ;;  %2263 = vmatpush2.msra.mxu0 %v2999_v54  ;;  %v2356_v8 = vld [vmem:[%s4854_s9 + $0xe8] sm:$0xff] }
 0x38a   :  { %v1544_v4 = vadd.f32 %v1538_v15, %v1409_v27  ;;  %2264 = vmatprep.subr.mxu0 %v4888_v7  ;;  %v2998_v15 = vld [vmem:[%s4853_s8 + $0x120] sm:$0xff]  ;;  %v2341_v27 = vld [vmem:[%s4854_s9 + $0x70] sm:$0xff] }
 0x38b   :  { %2265 = vmatpush2.msra.mxu0 %v2998_v15 }
 0x38c   :  { %3067 = vmatprep.subr.mxu0 %v4888_v7 }
 0x39a   :  { %v1665_v56 = vpop.f32.mrf.mxu0 }
 0x39b   :  { %v1676_v41 = vadd.f32 %v1665_v56, %v1541_v40  ;;  %v2103_v56 = vld [vmem:[%s4853_s8 + $0x80] sm:$0xff] }
 0x39c   :  { %v1667_v59 = vpop.f32.mrf.mxu0  ;;  %v2363_v40 = vld [vmem:[%s4854_s9 + $0x120] sm:$0xff] }
 0x39d   :  { %v1677_v60 = vadd.f32 %v1667_v59, %v1542_v43  ;;  %v2338_v43 = vld [vmem:[%s4854_s9 + $0x58] sm:$0xff] }
 0x39f   :  { %v1671_v1 = vpop.f32.mrf.mxu0 }
 0x3a0   :  { %v1678_v17 = vadd.f32 %v1671_v1, %v1543_v2  ;;  %v2365_v2 = vld [vmem:[%s4854_s9 + $0x130] sm:$0xff] }
 0x3a1   :  { %v1800_v62 = vpop.f32.mrf.mxu1  ;;  %v1673_v18 = vpop.f32.mrf.mxu0 }
 0x3a2   :  { %v1679_v63 = vadd.f32 %v1673_v18, %v1544_v4  ;;  %v1811_v6 = vadd.f32 %v1800_v62, %v1676_v41  ;;  %v2342_v18 = vld [vmem:[%s4854_s9 + $0x78] sm:$0xff]  ;;  %v2351_v41 = vld [vmem:[%s4854_s9 + $0xc0] sm:$0xff] }
 0x3a3   :  { %v1802_v53 = vpop.f32.mrf.mxu1  ;;  %v2366_v4 = vld [vmem:[%s4854_s9 + $0x138] sm:$0xff] }
 0x3a4   :  { %v1812_v9 = vadd.f32 %v1802_v53, %v1677_v60  ;;  %v2362_v60 = vld [vmem:[%s4854_s9 + $0x118] sm:$0xff] }
 0x3a5   :  { %v1806_v11 = vpop.f32.mrf.mxu1 }
 0x3a6   :  { %v1813_v24 = vadd.f32 %v1806_v11, %v1678_v17  ;;  %v2357_v11 = vld [vmem:[%s4854_s9 + $0xf0] sm:$0xff] }
 0x3a7   :  { %v1808_v21 = vpop.f32.mrf.mxu1  ;;  %v2337_v17 = vld [vmem:[%s4854_s9 + $0x50] sm:$0xff] }
 0x3a8   :  { %v1814_v13 = vadd.f32 %v1808_v21, %v1679_v63  ;;  %v2354_v21 = vld [vmem:[%s4854_s9 + $0xd8] sm:$0xff]  ;;  %v2353_v63 = vld [vmem:[%s4854_s9 + $0xd0] sm:$0xff] }
 0x3ba   :  { %v1918_v26 = vpop.f32.mrf.mxu0 }
 0x3bb   :  { %v1929_v3 = vadd.f32 %v1918_v26, %v1811_v6  ;;  %v2340_v26 = vld [vmem:[%s4854_s9 + $0x68] sm:$0xff]  ;;  %v2334_v6 = vld [vmem:[%s4854_s9 + $0x38] sm:$0xff] }
 0x3bc   :  { %v1920_v30 = vpop.f32.mrf.mxu0 }
 0x3bd   :  { %v1930_v20 = vadd.f32 %v1920_v30, %v1812_v9  ;;  %v2364_v30 = vld [vmem:[%s4854_s9 + $0x128] sm:$0xff]  ;;  %v2350_v9 = vld [vmem:[%s4854_s9 + $0xb8] sm:$0xff] }
 0x3be   :  { %v1924_v34 = vpop.f32.mrf.mxu0 }
 0x3bf   :  { %v1931_v38 = vadd.f32 %v1924_v34, %v1813_v24  ;;  %v2352_v34 = vld [vmem:[%s4854_s9 + $0xc8] sm:$0xff]  ;;  %v2361_v24 = vld [vmem:[%s4854_s9 + $0x110] sm:$0xff] }
 0x3c0   :  { %v1926_v57 = vpop.f32.mrf.mxu0 }
 0x3c1   :  { %v1932_v39 = vadd.f32 %v1926_v57, %v1814_v13  ;;  %v2336_v13 = vld [vmem:[%s4854_s9 + $0x48] sm:$0xff]  ;;  %v2335_v57 = vld [vmem:[%s4854_s9 + $0x40] sm:$0xff] }
 0x3c3   :  { %1966 = vmatprep.subr.mxu1 %v1932_v39 }
 0x3c4   :  { %1967 = vmatpush1.msra.mxu1 %v1931_v38 }
 0x3c5   :  { %1968 = vmatprep.subr.mxu1 %v1930_v20 }
 0x3c6   :  { %1969 = vmatpush1.msra.mxu1 %v1929_v3 }
 0x3c7   :  { %2978 = vmatmul.mubr.msk.f32.vlgmr.msra.gmra.mxu1 %vm1934_vm2, %v1933_v47  ;;  %2042 = vmatprep.subr.mxu1 %v1932_v39  ;;  %v2360_v39 = vld [vmem:[%s4854_s9 + $0x108] sm:$0xff] }
 0x3c8   :  { %2043 = vmatpush1.msra.mxu1 %v1931_v38  ;;  %2078 = vmatprep.mubr.f32.mxu1 %v4888_v7  ;;  %v2349_v38 = vld [vmem:[%s4854_s9 + $0xb0] sm:$0xff]  ;;  %v2332_v47 = vld [vmem:[%s4854_s9 + $0x28] sm:$0xff] }
 0x3c9   :  { %2044 = vmatprep.subr.mxu1 %v1930_v20  ;;  %v2333_v20 = vld [vmem:[%s4854_s9 + $0x30] sm:$0xff] }
 0x3ca   :  { %2045 = vmatpush1.msra.mxu1 %v1929_v3  ;;  %v2348_v3 = vld [vmem:[%s4854_s9 + $0xa8] sm:$0xff] }
 0x3cb   :  { %2980 = vmatmul.mubr.msk.f32.vlgmr.msra.gmra.mxu1 %vm1934_vm2, %v2979_v0  ;;  %2111 = vmatprep.subr.mxu1 %v4888_v7  ;;  %v2347_v0 = vld [vmem:[%s4854_s9 + $0xa0] sm:$0xff] }
 0x3cc   :  { %2112 = vmatpush1.msra.mxu1 %v2102_v12  ;;  %v2331_v12 = vld [vmem:[%s4854_s9 + $0x20] sm:$0xff] }
 0x3cd   :  { %2113 = vmatprep.subr.mxu1 %v4888_v7 }
 0x3ce   :  { %2114 = vmatpush1.msra.mxu1 %v2101_v48  ;;  %v2346_v48 = vld [vmem:[%s4854_s9 + $0x98] sm:$0xff] }
 0x3cf   :  { %2115 = vmatprep.subr.mxu1 %v4888_v7 }
 0x3d0   :  { %2116 = vmatpush1.msra.mxu1 %v2100_v16  ;;  %v2359_v16 = vld [vmem:[%s4854_s9 + $0x100] sm:$0xff] }
 0x3d1   :  { %2117 = vmatprep.subr.mxu1 %v4888_v7 }
 0x3d2   :  { %2118 = vmatpush1.msra.mxu1 %v2099_v5  ;;  %v2330_v5 = vld [vmem:[%s4854_s9 + $0x18] sm:$0xff] }
 0x3d3   :  { %2119 = vmatprep.subr.mxu1 %v4888_v7 }
 0x3d4   :  { %2120 = vmatpush1.msra.mxu1 %v2098_v55  ;;  %v2345_v55 = vld [vmem:[%s4854_s9 + $0x90] sm:$0xff] }
 0x3d5   :  { %2121 = vmatprep.subr.mxu1 %v4888_v7 }
 0x3d6   :  { %2122 = vmatpush1.msra.mxu1 %v2097_v37  ;;  %v2329_v37 = vld [vmem:[%s4854_s9 + $0x10] sm:$0xff] }
 0x3d7   :  { %2123 = vmatprep.subr.mxu1 %v4888_v7 }
 0x3d8   :  { %2124 = vmatpush1.msra.mxu1 %v2096_v61  ;;  %v2344_v61 = vld [vmem:[%s4854_s9 + $0x88] sm:$0xff] }
 0x3d9   :  { %2125 = vmatprep.subr.mxu1 %v4888_v7 }
 0x3da   :  { %2126 = vmatpush1.msra.mxu1 %v2095_v35 }
 0x3db   :  { %2127 = vmatprep.subr.mxu1 %v4888_v7 }
 0x3dc   :  { %2128 = vmatpush1.msra.mxu1 %v2094_v36 }
 0x3dd   :  { %2129 = vmatprep.subr.mxu1 %v4888_v7 }
 0x3de   :  { %2130 = vmatpush1.msra.mxu1 %v2093_v58 }
 0x3df   :  { %2131 = vmatprep.subr.mxu1 %v4888_v7 }
 0x3e0   :  { %2132 = vmatpush1.msra.mxu1 %v2092_v33  ;;  %v2328_v33 = vld [vmem:[%s4854_s9 + $0x8] sm:$0xff] }
 0x3e1   :  { %2133 = vmatprep.subr.mxu1 %v4888_v7 }
 0x3e2   :  { %2134 = vmatpush1.msra.mxu1 %v2091_v32  ;;  %v2343_v32 = vld [vmem:[%s4854_s9 + $0x80] sm:$0xff] }
 0x3e3   :  { %2135 = vmatprep.subr.mxu1 %v4888_v7 }
 0x3e4   :  { %2136 = vmatpush1.msra.mxu1 %v2090_v46  ;;  %v2327_v46 = vld [vmem:[%s4854_s9] sm:$0xff]  ;;  %s3146_s9 = smov 80  }
 0x3e5   :  { %2137 = vmatprep.subr.mxu1 %v4888_v7 }
 0x3e6   :  { %2138 = vmatpush1.msra.mxu1 %v2089_v49 }
 0x3e7   :  { %2139 = vmatprep.subr.mxu1 %v4888_v7 }
 0x3e8   :  { %2140 = vmatpush1.msra.mxu1 %v2088_v50 }
 0x3e9   :  { %2141 = vmatprep.subr.mxu1 %v4888_v7 }
 0x3ea   :  { %2142 = vmatpush1.msra.mxu1 %v2087_v29  ;;  %v4897_v29 = vld [vmem:[#allocation9_spill] sm:$0xff] }
 0x3eb   :  { %2167 = vmatprep.subr.mxu1 %v4888_v7  ;;  %v2313_v42 = vsub.s32 3, %v4897_v29 }
 0x3ec   :  { %2168 = vmatpush2.msra.mxu1 %v2106_v45 }
 0x3ed   :  { %2169 = vmatprep.subr.mxu1 %v4888_v7 }
 0x3ee   :  { %2170 = vmatpush2.msra.mxu1 %v2105_v28 }
 0x3ef   :  { %2171 = vmatprep.subr.mxu1 %v4888_v7 }
 0x3f0   :  { %2172 = vmatpush2.msra.mxu1 %v2104_v19  ;;  %v2301_v19 = vsub.s32 2, %v4897_v29 }
 0x3f1   :  { %2173 = vmatprep.subr.mxu1 %v4888_v7 }
 0x3f2   :  { %2174 = vmatpush2.msra.mxu1 %v2103_v56 }
 0x3f3   :  { %3011 = vmatprep.subr.mxu1 %v2358_v22 }
 0x487   :  { %v2004_v59 = vpop.f32.mrf.mxu1 }
 0x489   :  { %v2006_v62 = vpop.f32.mrf.mxu1 }
 0x48b   :  { %v2080_v1 = vpop.f32.mrf.mxu1 }
 0x48c   :  { %v2085_v31 = vmax.f32 %v2004_v59, %v2080_v1 }
 0x48d   :  { %v2082_v53 = vpop.f32.mrf.mxu1 }
 0x48e   :  { %v2086_v10 = vmax.f32 %v2006_v62, %v2082_v53 }
 0x490   :  { %2981 = vmatprep.mubr.msk.f32.mxu1 %vm2107_vm3, %v2086_v10  ;;  %3002 = vmatprep.mubr.msk.f32.mxu0 %vm2107_vm3, %v2086_v10 }
 0x491   :  { %2176 = vmatmul.mubr.f32.vlgmr.msra.gmra.mxu1 %v2085_v31  ;;  %2267 = vmatmul.mubr.f32.vlgmr.msra.gmra.mxu0 %v2085_v31 }
 0x492   :  { %3012 = vmatpush3.msra.mxu1 %v2342_v18  ;;  %3068 = vmatpush3.msra.mxu0 %v2366_v4  ;;  %v2522_v4 = vld [vmem:[%s4856_s11 + $0x20] sm:$0xff] }
 0x493   :  { %3013 = vmatprep.subr.mxu1 %v2357_v11  ;;  %3069 = vmatprep.subr.mxu0 %v4888_v7 }
 0x494   :  { %3014 = vmatpush3.msra.mxu1 %v2341_v27  ;;  %3070 = vmatpush3.msra.mxu0 %v2365_v2  ;;  %v2520_v2 = vld [vmem:[%s4856_s11 + $0x10] sm:$0xff] }
 0x495   :  { %3015 = vmatprep.subr.mxu1 %v2356_v8  ;;  %3071 = vmatprep.subr.mxu0 %v4888_v7 }
 0x496   :  { %3016 = vmatpush3.msra.mxu1 %v2340_v26  ;;  %3072 = vmatpush3.msra.mxu0 %v2364_v30  ;;  %v2524_v26 = vld [vmem:[%s4856_s11 + $0x30] sm:$0x3]  ;;  %v2518_v30 = vld [vmem:[%s4856_s11] sm:$0xff] }
 0x497   :  { %3017 = vmatprep.subr.mxu1 %v2355_v44  ;;  %3073 = vmatprep.subr.mxu0 %v4888_v7  ;;  %v2523_v44 = vld [vmem:[%s4856_s11 + $0x28] sm:$0xff] }
 0x498   :  { %3018 = vmatpush3.msra.mxu1 %v2339_v23  ;;  %3074 = vmatpush3.msra.mxu0 %v2363_v40  ;;  %v2521_v23 = vld [vmem:[%s4856_s11 + $0x18] sm:$0xff] }
 0x499   :  { %3019 = vmatprep.subr.mxu1 %v2354_v21  ;;  %3075 = vmatprep.subr.mxu0 %v4888_v7  ;;  %v2519_v21 = vld [vmem:[%s4856_s11 + $0x8] sm:$0xff] }
 0x49a   :  { %3020 = vmatpush3.msra.mxu1 %v2338_v43  ;;  %3076 = vmatpush3.msra.mxu0 %v2362_v60 }
 0x49b   :  { %3021 = vmatprep.subr.mxu1 %v2353_v63  ;;  %3077 = vmatprep.subr.mxu0 %v4888_v7 }
 0x49c   :  { %3022 = vmatpush3.msra.mxu1 %v2337_v17  ;;  %3078 = vmatpush3.msra.mxu0 %v2361_v24  ;;  %v3003_v17 = vld [vmem:[%s4855_s10] ss:$0 sm:$0xff] }
 0x49d   :  { %3023 = vmatprep.subr.mxu1 %v2352_v34  ;;  %3079 = vmatprep.subr.mxu0 %v4888_v7 }
 0x49e   :  { %3024 = vmatpush3.msra.mxu1 %v2336_v13  ;;  %3080 = vmatpush3.msra.mxu0 %v2360_v39  ;;  %v2610_v39 = vld [vmem:[%s4858_s13] sm:$0xff] }
 0x49f   :  { %3025 = vmatprep.subr.mxu1 %v2351_v41  ;;  %3081 = vmatprep.subr.mxu0 %v4888_v7 }
 0x4a0   :  { %3026 = vmatpush3.msra.mxu1 %v2335_v57  ;;  %3082 = vmatpush3.msra.mxu0 %v2359_v16  ;;  %v2612_v57 = vld [vmem:[%s4858_s13 + $0x10] sm:$0xf] }
 0x4a1   :  { %3027 = vmatprep.subr.mxu1 %v2350_v9  ;;  %3083 = vmatprep.mubr.msk.f32.mxu0 %vm3145_vm4, %v4888_v7  ;;  %v2611_v9 = vld [vmem:[%s4858_s13 + $0x8] sm:$0xff] }
 0x4a2   :  { %3028 = vmatpush3.msra.mxu1 %v2334_v6  ;;  %3086 = vmatprep.subr.mxu0 %v4888_v7  ;;  %v3005_v6 = vld [vmem:[%s4857_s12] ss:$0 sm:$0xff]  ;;  %s3149_s12 = smov [#allocation2]  }
 0x4a3   :  { %3029 = vmatprep.subr.mxu1 %v2349_v38  ;;  %s2717_s13 = sshll.u32 %s3149_s12, 4  ;;  %s2718_s13 = int_to_ptr.vmem [resolvable:$true] %s2717_s13 }
 0x4a4   :  { %3030 = vmatpush3.msra.mxu1 %v2333_v20  ;;  %p3127_p1 = scmp.lt.s32.totalorder %s2718_s13, %s2718_s13 }
 0x4a5   :  { %3031 = vmatprep.subr.mxu1 %v2348_v3 }
 0x4a6   :  { %3032 = vmatpush3.msra.mxu1 %v2332_v47 }
 0x4a7   :  { %3033 = vmatprep.subr.mxu1 %v2347_v0  ;;  %v3008_v0 = vld [vmem:[%s4859_s14] ss:$0 sm:$0xff]  ;;  %s3122_s14 = scalar_lea.vmem %s2718_s13, 32 }
 0x4a8   :  { %3034 = vmatpush3.msra.mxu1 %v2331_v12  ;;  %p3123_p0 = scmp.ne.s32.totalorder %s2718_s13, %s3122_s14  ;;  %p3128_p2 = scmp.lt.s32.totalorder %s3122_s14, %s3122_s14 }
 0x4a9   :  { %3035 = vmatprep.subr.mxu1 %v2346_v48 }
 0x4aa   :  { %3036 = vmatpush3.msra.mxu1 %v2330_v5  ;;  %p3129_p3 = por %p3128_p2, %p3127_p1 }
 0x4ab   :  { %3037 = vmatprep.subr.mxu1 %v2345_v55 }
 0x4ac   :  { %3038 = vmatpush3.msra.mxu1 %v2329_v37  ;;  %p3130_p4 = pnand %p3129_p3, %p3123_p0 }
 0x4ad   :  { %3039 = vmatprep.subr.mxu1 %v2344_v61 }
 0x4ae   :  { %3040 = vmatpush3.msra.mxu1 %v2328_v33 }
 0x4af   :  { %3041 = vmatprep.subr.mxu1 %v2343_v32 }
 0x4b0   :  { %3042 = vmatpush3.msra.mxu1 %v2327_v46 }
 0x4b1   :  { %3103 = vmatprep.subr.mxu1 %v4888_v7 }
 0x551   :  { %v2177_v35 = vpop.f32.mrf.mxu1  ;;  %v2268_v36 = vpop.f32.mrf.mxu0 }
 0x552   :  { %v2272_v58 = vmax.f32 %v2177_v35, %v2268_v36 }
 0x553   :  { %v2179_v49 = vpop.f32.mrf.mxu1  ;;  %v2270_v50 = vpop.f32.mrf.mxu0 }
 0x554   :  { %v2273_v45 = vmax.f32 %v2272_v58, 0.0 }
 0x556   :  { %v2275_v51 = vcombine.high %v2273_v45, %v2273_v45  ;;  %v2290_v28 = vrot.slane %v2273_v45, %v4895_v14  ;;  %v2314_v52 = vrot.slane %v2273_v45, %v2313_v42  ;;  %v2279_v15 = vrot.slane %v2273_v45, %v4896_v25 }
 0x557   :  { %v2302_v31 = vrot.slane %v2273_v45, %v2301_v19 }
 0x558   :  { %v2294_v54 = vrot.slane %v2275_v51, %v4895_v14  ;;  %v2318_v56 = vrot.slane %v2275_v51, %v2313_v42  ;;  %v2283_v59 = vrot.slane %v2275_v51, %v4896_v25  ;;  %v2306_v53 = vrot.slane %v2275_v51, %v2301_v19 }
 0x55a   :  { %v2295_v62 = vsel %vm2284_vm5, %v2294_v54, %v2290_v28  ;;  %v2319_v1 = vsel %vm2284_vm5, %v2318_v56, %v2314_v52  ;;  %v2285_v10 = vsel %vm2284_vm5, %v2283_v59, %v2279_v15  ;;  %v2307_v22 = vsel %vm2284_vm5, %v2306_v53, %v2302_v31 }
 0x55b   :  { %2296 = vrot.lane.b32.xlu0 %v2295_v62, %s3146_s9  ;;  %2320 = vrot.lane.b32.xlu1 %v2319_v1, %s3147_s29 }
 0x55f   :  { %2308 = vrot.lane.b32.xlu0 %v2307_v22, %s3148_s30 }
 0x5cd   :  { %v2297_v14 = vpop.permute.xlu0 %2296  ;;  %v2321_v18 = vpop.permute.xlu1 %2320 }
 0x5ce   :  { %3084 = vmatmul.mubr.msk.f32.vlgmr.msra.gmra.mxu0 %vm2374_vm7, %v2321_v18  ;;  %v2324_v8 = vsel %vm2323_vm8, %v2285_v10, %v2297_v14 }
 0x5cf   :  { %3100 = vmatprep.mubr.msk.f32.mxu0 %vm3145_vm4, %v4888_v7  ;;  %3087 = vmatpush3.msk.msra.mxu0 %vm1545_vm11, %v2524_v26 }
 0x5d0   :  { %3088 = vmatprep.subr.mxu0 %v4888_v7 }
 0x5d1   :  { %v2309_v25 = vpop.permute.xlu0 %2308  ;;  %3089 = vmatpush3.msra.mxu0 %v2523_v44 }
 0x5d2   :  { %v2325_v11 = vsel %vm2107_vm3, %v2297_v14, %v2309_v25  ;;  %3090 = vmatprep.subr.mxu0 %v4888_v7 }
 0x5d3   :  { %v2326_v27 = vsel %vm1067_vm6, %v2325_v11, %v2321_v18  ;;  %3091 = vmatpush3.msra.mxu0 %v2522_v4  ;;  %vm2532_vm6 = vcmask 408576  }
 0x5d4   :  { %2441 = vmatprep.mubr.f32.mxu1 %v2326_v27  ;;  %3092 = vmatprep.subr.mxu0 %v4888_v7 }
 0x5d5   :  { %2442 = vmatmul.mubr.f32.vlgmr.msra.gmra.mxu1 %v2324_v8  ;;  %3093 = vmatpush3.msra.mxu0 %v2521_v23 }
 0x5d6   :  { %3109 = vmatprep.mubr.msk.f32.mxu1 %vm3145_vm4, %v4888_v7  ;;  %3094 = vmatprep.subr.mxu0 %v4888_v7 }
 0x5d7   :  { %3095 = vmatpush3.msra.mxu0 %v2520_v2  ;;  %3104 = vmatpush3.msk.msra.mxu1 %vm87_vm0, %v2612_v57  ;;  %vm2620_vm0 = vcmask 162816  }
 0x5d8   :  { %3096 = vmatprep.subr.mxu0 %v4888_v7  ;;  %3105 = vmatprep.subr.mxu1 %v4888_v7 }
 0x5d9   :  { %3097 = vmatpush3.msra.mxu0 %v2519_v21  ;;  %3106 = vmatpush3.msra.mxu1 %v2611_v9 }
 0x5da   :  { %3098 = vmatprep.subr.mxu0 %v4888_v7  ;;  %3107 = vmatprep.subr.mxu1 %v4888_v7 }
 0x5db   :  { %3099 = vmatpush3.msra.mxu0 %v2518_v30  ;;  %3108 = vmatpush3.msra.mxu1 %v2610_v39 }
 0x68e   :  { %v2513_v43 = vpop.f32.mrf.mxu0 }
 0x690   :  { %v3085_v63 = vpop.f32.mrf.mxu0 }
 0x695   :  { %v3043_v40 = vpop.f32.mrf.mxu1 }
 0x697   :  { %v3044_v34 = vpop.f32.mrf.mxu1 }
 0x698   :  { %v3045_v60 = vadd.f32 %v3044_v34, %v3043_v40 }
 0x69a   :  { %v2444_v13 = vadd.f32 %v3045_v60, %v3003_v17 }
 0x69c   :  { %v2514_v41 = vadd.f32 %v2513_v43, %v2444_v13 }
 0x69e   :  { %v2517_v24 = vmax.f32 %v2514_v41, 0.0 }
 0x6a0   :  { %3101 = vmatmul.mubr.msk.f32.vlgmr.msra.gmra.mxu0 %vm2532_vm6, %v2517_v24 }
 0x760   :  { %v2605_v38 = vpop.f32.mrf.mxu0 }
 0x761   :  { %v2606_v20 = vadd.f32 %v3005_v6, %v2605_v38 }
 0x762   :  { %v3102_v3 = vpop.f32.mrf.mxu0 }
 0x763   :  { %v2609_v47 = vmax.f32 %v2606_v20, 0.0 }
 0x765   :  { %3110 = vmatmul.mubr.msk.f32.vlgmr.msra.gmra.mxu1 %vm2620_vm0, %v2609_v47 }
 0x825   :  { %v2693_v12 = vpop.f32.mrf.mxu1 }
 0x826   :  { %v2694_v48 = vadd.f32 %v3008_v0, %v2693_v12 }
 0x827   :  { %v3111_v16 = vpop.f32.mrf.mxu1 }
 0x828   :  { %v2698_v7 = vsel %vm2697_vm9, %v2694_v48, -inf }
 0x829   :  { %2699 = vmax.xlane.f32.xlu1 %v2698_v7 }
 0x8b2   :  { %v2700_v5 = vpop.xlane.xlu1 %2699 }
 0x8b3   :  { %v2701_v55 = vsub.f32 %v2694_v48, %v2700_v5 }
 0x8b5   :  { %v2702_v37 = vmul.f32 1.442695, %v2701_v55 }
 0x8b7   :  { %3118 = vpow2.f32 %v2702_v37 }
 0x8c4   :  { %v3119_v61 = vpop.eup %3118 }
 0x8c5   :  { %v2704_v35 = vsel %vm2697_vm9, %v3119_v61, 0.0 }
 0x8c6   :  { %2705 = vadd.xlane.f32.xlu0 %v2704_v35 }
 0x94f   :  { %v2706_v36 = vpop.xlane.xlu0 %2705 }
 0x950   :  { %3120 = vlog2.f32 %v2706_v36 }
 0x95d   :  { %v3121_v58 = vpop.eup %3120 }
 0x95e   :  { %v2708_v33 = vmul.f32 0.6931472, %v3121_v58 }
 0x960   :  { %v2709_v32 = vsub.f32 %v2701_v55, %v2708_v33 }
 0x962   :  { %2710 = vst.msk [vmem:[#allocation2] sm:$0x3] %vm2697_vm9, %v2709_v32 }
 0x963   :  { %3133 = shalt.err (!%p3130_p4)
}
 0x964   :  { %2720 = dma.vmem_to_hbm [thread:$0]  %s2718_s13, 32, %s4860_s15, [#allocation3]  }
 0x965   :  { %3142 = dma.done.wait [#allocation3], 32  }
 0x966   :  { %3143 = vsyncadd [#allocation3], 4294967264 }
 0x967   :  { %2724 = vsyncpa [#allocation3], 1 }

</bundles_post_ra>
